<compile_context>
chip_gen: v6e
topology: v6e:2x2x1
jax: 0.10.0
libtpu: 0.0.40
codegen_flags: <defaults>
</compile_context>

<pallas_src>
import jax
import jax.numpy as jnp
from jax.experimental import pallas as pl
from jax.experimental.pallas import tpu as pltpu


def _round_up(a, m):
    return (a + m - 1) // m * m


def lstm_model_forward(x_btd, params, *, t_chunk=None):
    """x_btd: (B, T, D_in) float32 (PyTorch batch_first convention)."""
    B, T, D_in = x_btd.shape
    w_ih_t = params["w_ih_t"]            # (D_in, 4H)
    w_hh_t = params["w_hh_t"]            # (H, 4H)
    H = w_hh_t.shape[0]
    D_out = params["fc_w_t"].shape[1]

    # ---- padded / tiled sizes ----------------------------------------------
    H_pad = _round_up(H, 128)            # lane-aligned gate blocks
    D_out_pad = _round_up(D_out, 128)    # lane-dense final output
    B_pad = _round_up(B, 16)             # sublane-aligned rows (bf16-safe)
    B_TILE = min(B_pad, 128)
    B_pad = _round_up(B_pad, B_TILE)
    nb = B_pad // B_TILE

    if t_chunk is None:
        t_chunk = min(T, 16)
    T_pad = _round_up(T, t_chunk)
    n_chunks = T_pad // t_chunk
    TC = t_chunk
    T_actual = T

    # ---- pad weights into gate-aligned layout ------------------------------
    def pad_gate_cols(w):
        # (..., 4*H) -> (..., 4*H_pad): each of the 4 gate blocks is padded to
        # H_pad so gate slices inside the kernel start on lane-tile boundaries.
        lead = w.shape[:-1]
        w4 = w.reshape(lead + (4, H))
        w4 = jnp.pad(w4, [(0, 0)] * len(lead) + [(0, 0), (0, H_pad - H)])
        return w4.reshape(lead + (4 * H_pad,))

    bias = params["b_ih"] + params["b_hh"]                       # (4H,)
    w_ih_t_pad = pad_gate_cols(w_ih_t)                           # (D_in, 4Hp)
    bias_pad = pad_gate_cols(bias)                               # (4Hp,)
    w_hh_t_pad = jnp.pad(pad_gate_cols(w_hh_t),
                         [(0, H_pad - H), (0, 0)]
                         ).astype(jnp.bfloat16)                  # (Hp, 4Hp) bf16

    fc_w_pad = jnp.pad(params["fc_w_t"],
                       [(0, H_pad - H), (0, D_out_pad - D_out)]) # (Hp, Dop)
    fc_b_pad = jnp.pad(params["fc_b"],
                       [(0, D_out_pad - D_out)]).reshape(1, D_out_pad)

    # ---- hoisted input projection: one big matmul in XLA -------------------
    x_tbd = jnp.transpose(x_btd, (1, 0, 2)).astype(jnp.float32)  # (T, B, D_in)
    xw = jnp.einsum("tbd,dg->tbg", x_tbd, w_ih_t_pad) + bias_pad # (T, B, 4Hp)
    xw = jnp.pad(xw, [(0, T_pad - T), (0, B_pad - B), (0, 0)])
    xw = xw.astype(jnp.bfloat16)                                 # (Tp, Bp, 4Hp)

    # ---- recurrence kernel: h @ W_hh + gate math, TC steps per grid iter ---
    def recurrence_kernel(xw_ref, w_hh_ref, hT_ref, h_scr, c_scr):
        c_idx = pl.program_id(1)

        @pl.when(c_idx == 0)
        def _():
            h_scr[...] = jnp.zeros_like(h_scr)
            c_scr[...] = jnp.zeros_like(c_scr)

        Hp = w_hh_ref.shape[0]

        def step(i, carry):
            h, c = carry
            pre = xw_ref[i].astype(jnp.float32)                  # (B_TILE, 4Hp)
            rec = jnp.dot(h.astype(jnp.bfloat16), w_hh_ref[...],
                          preferred_element_type=jnp.float32)
            gates = pre + rec                                    # f32 gate math
            # PyTorch gate order i, f, g, o; slices are lane-tile aligned.
            i_g = jax.nn.sigmoid(gates[:, 0 * Hp:1 * Hp])
            f_g = jax.nn.sigmoid(gates[:, 1 * Hp:2 * Hp])
            g_g = jnp.tanh(gates[:, 2 * Hp:3 * Hp])
            o_g = jax.nn.sigmoid(gates[:, 3 * Hp:4 * Hp])
            c_new = f_g * c + i_g * g_g
            h_new = o_g * jnp.tanh(c_new)
            if T_pad != T_actual:
                # Mask out padded time steps (only traced when padding exists).
                t = c_idx * TC + i
                m = (t < T_actual).astype(jnp.float32)
                h_new = m * h_new + (1.0 - m) * h
                c_new = m * c_new + (1.0 - m) * c
            return h_new, c_new

        h, c = jax.lax.fori_loop(0, TC, step, (h_scr[...], c_scr[...]),
                                 unroll=True)
        h_scr[...] = h
        c_scr[...] = c

        @pl.when(c_idx == pl.num_programs(1) - 1)
        def _():
            hT_ref[...] = h

    hT_pad = pl.pallas_call(
        recurrence_kernel,
        out_shape=jax.ShapeDtypeStruct((B_pad, H_pad), jnp.float32),
        grid_spec=pltpu.PrefetchScalarGridSpec(
            num_scalar_prefetch=0,
            grid=(nb, n_chunks),
            in_specs=[
                pl.BlockSpec((TC, B_TILE, 4 * H_pad), lambda b, c: (c, b, 0)),
                pl.BlockSpec((H_pad, 4 * H_pad), lambda b, c: (0, 0)),
            ],
            out_specs=pl.BlockSpec((B_TILE, H_pad), lambda b, c: (b, 0)),
            scratch_shapes=[
                pltpu.VMEM((B_TILE, H_pad), jnp.float32),        # h state
                pltpu.VMEM((B_TILE, H_pad), jnp.float32),        # c state
            ],
        ),
        compiler_params=pltpu.CompilerParams(
            dimension_semantics=("parallel", "arbitrary")),
    )(xw, w_hh_t_pad)

    # ---- final Linear + ReLU on h_T (separate tiny kernel, lane-dense) -----
    def fc_relu_kernel(h_ref, w_ref, b_ref, o_ref):
        y = jnp.dot(h_ref[...], w_ref[...],
                    preferred_element_type=jnp.float32) + b_ref[...]
        o_ref[...] = jnp.maximum(y, 0.0)

    out_pad = pl.pallas_call(
        fc_relu_kernel,
        out_shape=jax.ShapeDtypeStruct((B_pad, D_out_pad), jnp.float32),
        grid_spec=pltpu.PrefetchScalarGridSpec(
            num_scalar_prefetch=0,
            grid=(1,),
            in_specs=[
                pl.BlockSpec((B_pad, H_pad), lambda i: (0, 0)),
                pl.BlockSpec((H_pad, D_out_pad), lambda i: (0, 0)),
                pl.BlockSpec((1, D_out_pad), lambda i: (0, 0)),
            ],
            out_specs=pl.BlockSpec((B_pad, D_out_pad), lambda i: (0, 0)),
        ),
    )(hT_pad, fc_w_pad, fc_b_pad)

    return out_pad[:B, :D_out]


def lstm_model_ref(x_btd, params):
    """Pure-JAX f32 reference matching PyTorch nn.LSTM + Linear + relu."""
    w_ih_t, w_hh_t = params["w_ih_t"], params["w_hh_t"]
    b = params["b_ih"] + params["b_hh"]
    H = w_hh_t.shape[0]
    B = x_btd.shape[0]

    def step(carry, x_t):
        h, c = carry
        gates = x_t @ w_ih_t + h @ w_hh_t + b
        i_g = jax.nn.sigmoid(gates[:, 0 * H:1 * H])
        f_g = jax.nn.sigmoid(gates[:, 1 * H:2 * H])
        g_g = jnp.tanh(gates[:, 2 * H:3 * H])
        o_g = jax.nn.sigmoid(gates[:, 3 * H:4 * H])
        c = f_g * c + i_g * g_g
        h = o_g * jnp.tanh(c)
        return (h, c), None

    h0 = jnp.zeros((B, H), jnp.float32)
    c0 = jnp.zeros((B, H), jnp.float32)
    (h_T, _), _ = jax.lax.scan(step, (h0, c0),
                               jnp.transpose(x_btd, (1, 0, 2)))
    y = h_T @ params["fc_w_t"] + params["fc_b"]
    return jnp.maximum(y, 0.0)


def init_params(key, input_size, hidden_size, output_size):
    """Deterministic synthetic init, PyTorch-style U(-1/sqrt(H), 1/sqrt(H))."""
    ks = jax.random.split(key, 6)
    s = 1.0 / jnp.sqrt(hidden_size)
    H4 = 4 * hidden_size
    w_ih = jax.random.uniform(ks[0], (H4, input_size), jnp.float32, -s, s)
    w_hh = jax.random.uniform(ks[1], (H4, hidden_size), jnp.float32, -s, s)
    b_ih = jax.random.uniform(ks[2], (H4,), jnp.float32, -s, s)
    b_hh = jax.random.uniform(ks[3], (H4,), jnp.float32, -s, s)
    fc_w = jax.random.uniform(ks[4], (output_size, hidden_size), jnp.float32, -s, s)
    fc_b = jax.random.uniform(ks[5], (output_size,), jnp.float32, -s, s)
    return {
        "w_ih_t": w_ih.T,          # (D_in, 4H)
        "w_hh_t": w_hh.T,          # (H, 4H)
        "b_ih": b_ih,
        "b_hh": b_hh,
        "fc_w_t": fc_w.T,          # (H, D_out)
        "fc_b": fc_b,
    }


if __name__ == "__main__":
    # Small shapes consistent with the module (hidden_size=64 in the spec;
    # input/output sizes come from data, pick small placeholders).
    B, T, D_IN, H, D_OUT = 4, 8, 16, 64, 16

    key = jax.random.PRNGKey(0)
    k_x, k_p = jax.random.split(key)
    x = jax.random.normal(k_x, (B, T, D_IN), jnp.float32)
    params = init_params(k_p, D_IN, H, D_OUT)

    out = jax.block_until_ready(lstm_model_forward(x, params))
    ref = jax.block_until_ready(lstm_model_ref(x, params))

    assert out.shape == (B, D_OUT)
    # Tolerance loosened vs. pure-f32 reference because the recurrent matmul
    # operands (W_hh, xW pre-activations) are bf16 on the MXU.
    assert jnp.allclose(out, ref, atol=2e-2, rtol=2e-2), "mismatch vs. JAX reference"

    print("KERNEL_OK")
</pallas_src>

<mosaic_0001>
module attributes {stable_mosaic.version = 11 : i64} {
  func.func @recurrence_kernel(%arg0: i32, %arg1: i32, %arg2: memref<8x16x512xbf16, #tpu.memory_space<vmem>>, %arg3: memref<128x512xbf16, #tpu.memory_space<vmem>>, %arg4: memref<16x128xf32, #tpu.memory_space<vmem>>, %arg5: memref<16x128xf32, #tpu.memory_space<vmem>>, %arg6: memref<16x128xf32, #tpu.memory_space<vmem>>) attributes {dimension_semantics = [#tpu.dimension_semantics<parallel>, #tpu.dimension_semantics<arbitrary>], iteration_bounds = array<i64: 1, 1>, scalar_prefetch = 0 : i64, scratch_operands = 2 : i64, tpu.core_type = #tpu.core_type<tc>, window_params = [{transform_indices = @transform_0, window_bounds = array<i64: 8, 16, 512>}, {pipeline_mode = #tpu.pipeline_mode<synchronous>, transform_indices = @transform_1, window_bounds = array<i64: 128, 512>}, {transform_indices = @transform_2, window_bounds = array<i64: 16, 128>}]} {
    %c0_i32 = arith.constant 0 : i32
    %0 = arith.cmpi eq, %arg1, %c0_i32 : i32
    %1 = arith.extui %0 : i1 to i32
    %c0_i32_0 = arith.constant 0 : i32
    %2 = arith.cmpi ne, %1, %c0_i32_0 : i32
    scf.if %2 {
      %cst_74 = arith.constant 0.000000e+00 : f32
      %274 = vector.broadcast %cst_74 : f32 to vector<16x128xf32>
      %c0_75 = arith.constant 0 : index
      %c0_76 = arith.constant 0 : index
      %275 = vector.load %arg5[%c0_75, %c0_76] : memref<16x128xf32, #tpu.memory_space<vmem>>, vector<16x128xf32>
      tpu.vector_store %arg5[%c0_75, %c0_76], %274 {strides = array<i32>} : memref<16x128xf32, #tpu.memory_space<vmem>>, vector<16x128xf32>,
      %cst_77 = arith.constant 0.000000e+00 : f32
      %276 = vector.broadcast %cst_77 : f32 to vector<16x128xf32>
      %c0_78 = arith.constant 0 : index
      %c0_79 = arith.constant 0 : index
      %277 = vector.load %arg6[%c0_78, %c0_79] : memref<16x128xf32, #tpu.memory_space<vmem>>, vector<16x128xf32>
      tpu.vector_store %arg6[%c0_78, %c0_79], %276 {strides = array<i32>} : memref<16x128xf32, #tpu.memory_space<vmem>>, vector<16x128xf32>,
    } else {
    }
    %c0 = arith.constant 0 : index
    %c0_1 = arith.constant 0 : index
    %3 = vector.load %arg5[%c0, %c0_1] : memref<16x128xf32, #tpu.memory_space<vmem>>, vector<16x128xf32>
    %c0_2 = arith.constant 0 : index
    %c0_3 = arith.constant 0 : index
    %4 = vector.load %arg6[%c0_2, %c0_3] : memref<16x128xf32, #tpu.memory_space<vmem>>, vector<16x128xf32>
    %c0_i32_4 = arith.constant 0 : i32
    %5 = arith.index_cast %c0_i32_4 : i32 to index
    %c0_5 = arith.constant 0 : index
    %c0_6 = arith.constant 0 : index
    %6 = vector.load %arg2[%5, %c0_5, %c0_6] : memref<8x16x512xbf16, #tpu.memory_space<vmem>>, vector<1x16x512xbf16>
    %7 = vector.shape_cast %6 : vector<1x16x512xbf16> to vector<16x512xbf16>
    %8 = arith.extf %7 : vector<16x512xbf16> to vector<16x512xf32>
    %9 = arith.truncf %3 : vector<16x128xf32> to vector<16x128xbf16>
    %c0_7 = arith.constant 0 : index
    %c0_8 = arith.constant 0 : index
    %10 = vector.load %arg3[%c0_7, %c0_8] : memref<128x512xbf16, #tpu.memory_space<vmem>>, vector<128x512xbf16>
    %cst = arith.constant dense<0.000000e+00> : vector<16x512xf32>
    %11 = tpu.matmul %9, %10, %cst {dimension_numbers = #tpu.dot_dimension_numbers<[1], [0], [0], [1], [0, 0, 1, 1], [], []>} : vector<16x128xbf16>, vector<128x512xbf16>, vector<16x512xf32> -> vector<16x512xf32>
    %12 = arith.addf %8, %11 : vector<16x512xf32>
    %13 = vector.extract_strided_slice %12 {offsets = [0, 0], sizes = [16, 128], strides = [1, 1]} : vector<16x512xf32> to vector<16x128xf32>
    %14 = arith.negf %13 : vector<16x128xf32>
    %15 = math.exp %14 : vector<16x128xf32>
    %cst_9 = arith.constant 1.000000e+00 : f32
    %16 = vector.broadcast %cst_9 : f32 to vector<16x128xf32>
    %17 = arith.addf %16, %15 : vector<16x128xf32>
    %18 = arith.divf %16, %17 : vector<16x128xf32>
    %19 = vector.extract_strided_slice %12 {offsets = [0, 128], sizes = [16, 128], strides = [1, 1]} : vector<16x512xf32> to vector<16x128xf32>
    %20 = arith.negf %19 : vector<16x128xf32>
    %21 = math.exp %20 : vector<16x128xf32>
    %cst_10 = arith.constant 1.000000e+00 : f32
    %22 = vector.broadcast %cst_10 : f32 to vector<16x128xf32>
    %23 = arith.addf %22, %21 : vector<16x128xf32>
    %24 = arith.divf %22, %23 : vector<16x128xf32>
    %25 = vector.extract_strided_slice %12 {offsets = [0, 256], sizes = [16, 128], strides = [1, 1]} : vector<16x512xf32> to vector<16x128xf32>
    %26 = math.tanh %25 : vector<16x128xf32>
    %27 = vector.extract_strided_slice %12 {offsets = [0, 384], sizes = [16, 128], strides = [1, 1]} : vector<16x512xf32> to vector<16x128xf32>
    %28 = arith.negf %27 : vector<16x128xf32>
    %29 = math.exp %28 : vector<16x128xf32>
    %cst_11 = arith.constant 1.000000e+00 : f32
    %30 = vector.broadcast %cst_11 : f32 to vector<16x128xf32>
    %31 = arith.addf %30, %29 : vector<16x128xf32>
    %32 = arith.divf %30, %31 : vector<16x128xf32>
    %33 = arith.mulf %24, %4 : vector<16x128xf32>
    %34 = arith.mulf %18, %26 : vector<16x128xf32>
    %35 = arith.addf %33, %34 : vector<16x128xf32>
    %36 = math.tanh %35 : vector<16x128xf32>
    %37 = arith.mulf %32, %36 : vector<16x128xf32>
    %c1_i32 = arith.constant 1 : i32
    %38 = arith.index_cast %c1_i32 : i32 to index
    %c0_12 = arith.constant 0 : index
    %c0_13 = arith.constant 0 : index
    %39 = vector.load %arg2[%38, %c0_12, %c0_13] : memref<8x16x512xbf16, #tpu.memory_space<vmem>>, vector<1x16x512xbf16>
    %40 = vector.shape_cast %39 : vector<1x16x512xbf16> to vector<16x512xbf16>
    %41 = arith.extf %40 : vector<16x512xbf16> to vector<16x512xf32>
    %42 = arith.truncf %37 : vector<16x128xf32> to vector<16x128xbf16>
    %c0_14 = arith.constant 0 : index
    %c0_15 = arith.constant 0 : index
    %43 = vector.load %arg3[%c0_14, %c0_15] : memref<128x512xbf16, #tpu.memory_space<vmem>>, vector<128x512xbf16>
    %cst_16 = arith.constant dense<0.000000e+00> : vector<16x512xf32>
    %44 = tpu.matmul %42, %43, %cst_16 {dimension_numbers = #tpu.dot_dimension_numbers<[1], [0], [0], [1], [0, 0, 1, 1], [], []>} : vector<16x128xbf16>, vector<128x512xbf16>, vector<16x512xf32> -> vector<16x512xf32>
    %45 = arith.addf %41, %44 : vector<16x512xf32>
    %46 = vector.extract_strided_slice %45 {offsets = [0, 0], sizes = [16, 128], strides = [1, 1]} : vector<16x512xf32> to vector<16x128xf32>
    %47 = arith.negf %46 : vector<16x128xf32>
    %48 = math.exp %47 : vector<16x128xf32>
    %cst_17 = arith.constant 1.000000e+00 : f32
    %49 = vector.broadcast %cst_17 : f32 to vector<16x128xf32>
    %50 = arith.addf %49, %48 : vector<16x128xf32>
    %51 = arith.divf %49, %50 : vector<16x128xf32>
    %52 = vector.extract_strided_slice %45 {offsets = [0, 128], sizes = [16, 128], strides = [1, 1]} : vector<16x512xf32> to vector<16x128xf32>
    %53 = arith.negf %52 : vector<16x128xf32>
    %54 = math.exp %53 : vector<16x128xf32>
    %cst_18 = arith.constant 1.000000e+00 : f32
    %55 = vector.broadcast %cst_18 : f32 to vector<16x128xf32>
    %56 = arith.addf %55, %54 : vector<16x128xf32>
    %57 = arith.divf %55, %56 : vector<16x128xf32>
    %58 = vector.extract_strided_slice %45 {offsets = [0, 256], sizes = [16, 128], strides = [1, 1]} : vector<16x512xf32> to vector<16x128xf32>
    %59 = math.tanh %58 : vector<16x128xf32>
    %60 = vector.extract_strided_slice %45 {offsets = [0, 384], sizes = [16, 128], strides = [1, 1]} : vector<16x512xf32> to vector<16x128xf32>
    %61 = arith.negf %60 : vector<16x128xf32>
    %62 = math.exp %61 : vector<16x128xf32>
    %cst_19 = arith.constant 1.000000e+00 : f32
    %63 = vector.broadcast %cst_19 : f32 to vector<16x128xf32>
    %64 = arith.addf %63, %62 : vector<16x128xf32>
    %65 = arith.divf %63, %64 : vector<16x128xf32>
    %66 = arith.mulf %57, %35 : vector<16x128xf32>
    %67 = arith.mulf %51, %59 : vector<16x128xf32>
    %68 = arith.addf %66, %67 : vector<16x128xf32>
    %69 = math.tanh %68 : vector<16x128xf32>
    %70 = arith.mulf %65, %69 : vector<16x128xf32>
    %c2_i32 = arith.constant 2 : i32
    %71 = arith.index_cast %c2_i32 : i32 to index
    %c0_20 = arith.constant 0 : index
    %c0_21 = arith.constant 0 : index
    %72 = vector.load %arg2[%71, %c0_20, %c0_21] : memref<8x16x512xbf16, #tpu.memory_space<vmem>>, vector<1x16x512xbf16>
    %73 = vector.shape_cast %72 : vector<1x16x512xbf16> to vector<16x512xbf16>
    %74 = arith.extf %73 : vector<16x512xbf16> to vector<16x512xf32>
    %75 = arith.truncf %70 : vector<16x128xf32> to vector<16x128xbf16>
    %c0_22 = arith.constant 0 : index
    %c0_23 = arith.constant 0 : index
    %76 = vector.load %arg3[%c0_22, %c0_23] : memref<128x512xbf16, #tpu.memory_space<vmem>>, vector<128x512xbf16>
    %cst_24 = arith.constant dense<0.000000e+00> : vector<16x512xf32>
    %77 = tpu.matmul %75, %76, %cst_24 {dimension_numbers = #tpu.dot_dimension_numbers<[1], [0], [0], [1], [0, 0, 1, 1], [], []>} : vector<16x128xbf16>, vector<128x512xbf16>, vector<16x512xf32> -> vector<16x512xf32>
    %78 = arith.addf %74, %77 : vector<16x512xf32>
    %79 = vector.extract_strided_slice %78 {offsets = [0, 0], sizes = [16, 128], strides = [1, 1]} : vector<16x512xf32> to vector<16x128xf32>
    %80 = arith.negf %79 : vector<16x128xf32>
    %81 = math.exp %80 : vector<16x128xf32>
    %cst_25 = arith.constant 1.000000e+00 : f32
    %82 = vector.broadcast %cst_25 : f32 to vector<16x128xf32>
    %83 = arith.addf %82, %81 : vector<16x128xf32>
    %84 = arith.divf %82, %83 : vector<16x128xf32>
    %85 = vector.extract_strided_slice %78 {offsets = [0, 128], sizes = [16, 128], strides = [1, 1]} : vector<16x512xf32> to vector<16x128xf32>
    %86 = arith.negf %85 : vector<16x128xf32>
    %87 = math.exp %86 : vector<16x128xf32>
    %cst_26 = arith.constant 1.000000e+00 : f32
    %88 = vector.broadcast %cst_26 : f32 to vector<16x128xf32>
    %89 = arith.addf %88, %87 : vector<16x128xf32>
    %90 = arith.divf %88, %89 : vector<16x128xf32>
    %91 = vector.extract_strided_slice %78 {offsets = [0, 256], sizes = [16, 128], strides = [1, 1]} : vector<16x512xf32> to vector<16x128xf32>
    %92 = math.tanh %91 : vector<16x128xf32>
    %93 = vector.extract_strided_slice %78 {offsets = [0, 384], sizes = [16, 128], strides = [1, 1]} : vector<16x512xf32> to vector<16x128xf32>
    %94 = arith.negf %93 : vector<16x128xf32>
    %95 = math.exp %94 : vector<16x128xf32>
    %cst_27 = arith.constant 1.000000e+00 : f32
    %96 = vector.broadcast %cst_27 : f32 to vector<16x128xf32>
    %97 = arith.addf %96, %95 : vector<16x128xf32>
    %98 = arith.divf %96, %97 : vector<16x128xf32>
    %99 = arith.mulf %90, %68 : vector<16x128xf32>
    %100 = arith.mulf %84, %92 : vector<16x128xf32>
    %101 = arith.addf %99, %100 : vector<16x128xf32>
    %102 = math.tanh %101 : vector<16x128xf32>
    %103 = arith.mulf %98, %102 : vector<16x128xf32>
    %c3_i32 = arith.constant 3 : i32
    %104 = arith.index_cast %c3_i32 : i32 to index
    %c0_28 = arith.constant 0 : index
    %c0_29 = arith.constant 0 : index
    %105 = vector.load %arg2[%104, %c0_28, %c0_29] : memref<8x16x512xbf16, #tpu.memory_space<vmem>>, vector<1x16x512xbf16>
    %106 = vector.shape_cast %105 : vector<1x16x512xbf16> to vector<16x512xbf16>
    %107 = arith.extf %106 : vector<16x512xbf16> to vector<16x512xf32>
    %108 = arith.truncf %103 : vector<16x128xf32> to vector<16x128xbf16>
    %c0_30 = arith.constant 0 : index
    %c0_31 = arith.constant 0 : index
    %109 = vector.load %arg3[%c0_30, %c0_31] : memref<128x512xbf16, #tpu.memory_space<vmem>>, vector<128x512xbf16>
    %cst_32 = arith.constant dense<0.000000e+00> : vector<16x512xf32>
    %110 = tpu.matmul %108, %109, %cst_32 {dimension_numbers = #tpu.dot_dimension_numbers<[1], [0], [0], [1], [0, 0, 1, 1], [], []>} : vector<16x128xbf16>, vector<128x512xbf16>, vector<16x512xf32> -> vector<16x512xf32>
    %111 = arith.addf %107, %110 : vector<16x512xf32>
    %112 = vector.extract_strided_slice %111 {offsets = [0, 0], sizes = [16, 128], strides = [1, 1]} : vector<16x512xf32> to vector<16x128xf32>
    %113 = arith.negf %112 : vector<16x128xf32>
    %114 = math.exp %113 : vector<16x128xf32>
    %cst_33 = arith.constant 1.000000e+00 : f32
    %115 = vector.broadcast %cst_33 : f32 to vector<16x128xf32>
    %116 = arith.addf %115, %114 : vector<16x128xf32>
    %117 = arith.divf %115, %116 : vector<16x128xf32>
    %118 = vector.extract_strided_slice %111 {offsets = [0, 128], sizes = [16, 128], strides = [1, 1]} : vector<16x512xf32> to vector<16x128xf32>
    %119 = arith.negf %118 : vector<16x128xf32>
    %120 = math.exp %119 : vector<16x128xf32>
    %cst_34 = arith.constant 1.000000e+00 : f32
    %121 = vector.broadcast %cst_34 : f32 to vector<16x128xf32>
    %122 = arith.addf %121, %120 : vector<16x128xf32>
    %123 = arith.divf %121, %122 : vector<16x128xf32>
    %124 = vector.extract_strided_slice %111 {offsets = [0, 256], sizes = [16, 128], strides = [1, 1]} : vector<16x512xf32> to vector<16x128xf32>
    %125 = math.tanh %124 : vector<16x128xf32>
    %126 = vector.extract_strided_slice %111 {offsets = [0, 384], sizes = [16, 128], strides = [1, 1]} : vector<16x512xf32> to vector<16x128xf32>
    %127 = arith.negf %126 : vector<16x128xf32>
    %128 = math.exp %127 : vector<16x128xf32>
    %cst_35 = arith.constant 1.000000e+00 : f32
    %129 = vector.broadcast %cst_35 : f32 to vector<16x128xf32>
    %130 = arith.addf %129, %128 : vector<16x128xf32>
    %131 = arith.divf %129, %130 : vector<16x128xf32>
    %132 = arith.mulf %123, %101 : vector<16x128xf32>
    %133 = arith.mulf %117, %125 : vector<16x128xf32>
    %134 = arith.addf %132, %133 : vector<16x128xf32>
    %135 = math.tanh %134 : vector<16x128xf32>
    %136 = arith.mulf %131, %135 : vector<16x128xf32>
    %c4_i32 = arith.constant 4 : i32
    %137 = arith.index_cast %c4_i32 : i32 to index
    %c0_36 = arith.constant 0 : index
    %c0_37 = arith.constant 0 : index
    %138 = vector.load %arg2[%137, %c0_36, %c0_37] : memref<8x16x512xbf16, #tpu.memory_space<vmem>>, vector<1x16x512xbf16>
    %139 = vector.shape_cast %138 : vector<1x16x512xbf16> to vector<16x512xbf16>
    %140 = arith.extf %139 : vector<16x512xbf16> to vector<16x512xf32>
    %141 = arith.truncf %136 : vector<16x128xf32> to vector<16x128xbf16>
    %c0_38 = arith.constant 0 : index
    %c0_39 = arith.constant 0 : index
    %142 = vector.load %arg3[%c0_38, %c0_39] : memref<128x512xbf16, #tpu.memory_space<vmem>>, vector<128x512xbf16>
    %cst_40 = arith.constant dense<0.000000e+00> : vector<16x512xf32>
    %143 = tpu.matmul %141, %142, %cst_40 {dimension_numbers = #tpu.dot_dimension_numbers<[1], [0], [0], [1], [0, 0, 1, 1], [], []>} : vector<16x128xbf16>, vector<128x512xbf16>, vector<16x512xf32> -> vector<16x512xf32>
    %144 = arith.addf %140, %143 : vector<16x512xf32>
    %145 = vector.extract_strided_slice %144 {offsets = [0, 0], sizes = [16, 128], strides = [1, 1]} : vector<16x512xf32> to vector<16x128xf32>
    %146 = arith.negf %145 : vector<16x128xf32>
    %147 = math.exp %146 : vector<16x128xf32>
    %cst_41 = arith.constant 1.000000e+00 : f32
    %148 = vector.broadcast %cst_41 : f32 to vector<16x128xf32>
    %149 = arith.addf %148, %147 : vector<16x128xf32>
    %150 = arith.divf %148, %149 : vector<16x128xf32>
    %151 = vector.extract_strided_slice %144 {offsets = [0, 128], sizes = [16, 128], strides = [1, 1]} : vector<16x512xf32> to vector<16x128xf32>
    %152 = arith.negf %151 : vector<16x128xf32>
    %153 = math.exp %152 : vector<16x128xf32>
    %cst_42 = arith.constant 1.000000e+00 : f32
    %154 = vector.broadcast %cst_42 : f32 to vector<16x128xf32>
    %155 = arith.addf %154, %153 : vector<16x128xf32>
    %156 = arith.divf %154, %155 : vector<16x128xf32>
    %157 = vector.extract_strided_slice %144 {offsets = [0, 256], sizes = [16, 128], strides = [1, 1]} : vector<16x512xf32> to vector<16x128xf32>
    %158 = math.tanh %157 : vector<16x128xf32>
    %159 = vector.extract_strided_slice %144 {offsets = [0, 384], sizes = [16, 128], strides = [1, 1]} : vector<16x512xf32> to vector<16x128xf32>
    %160 = arith.negf %159 : vector<16x128xf32>
    %161 = math.exp %160 : vector<16x128xf32>
    %cst_43 = arith.constant 1.000000e+00 : f32
    %162 = vector.broadcast %cst_43 : f32 to vector<16x128xf32>
    %163 = arith.addf %162, %161 : vector<16x128xf32>
    %164 = arith.divf %162, %163 : vector<16x128xf32>
    %165 = arith.mulf %156, %134 : vector<16x128xf32>
    %166 = arith.mulf %150, %158 : vector<16x128xf32>
    %167 = arith.addf %165, %166 : vector<16x128xf32>
    %168 = math.tanh %167 : vector<16x128xf32>
    %169 = arith.mulf %164, %168 : vector<16x128xf32>
    %c5_i32 = arith.constant 5 : i32
    %170 = arith.index_cast %c5_i32 : i32 to index
    %c0_44 = arith.constant 0 : index
    %c0_45 = arith.constant 0 : index
    %171 = vector.load %arg2[%170, %c0_44, %c0_45] : memref<8x16x512xbf16, #tpu.memory_space<vmem>>, vector<1x16x512xbf16>
    %172 = vector.shape_cast %171 : vector<1x16x512xbf16> to vector<16x512xbf16>
    %173 = arith.extf %172 : vector<16x512xbf16> to vector<16x512xf32>
    %174 = arith.truncf %169 : vector<16x128xf32> to vector<16x128xbf16>
    %c0_46 = arith.constant 0 : index
    %c0_47 = arith.constant 0 : index
    %175 = vector.load %arg3[%c0_46, %c0_47] : memref<128x512xbf16, #tpu.memory_space<vmem>>, vector<128x512xbf16>
    %cst_48 = arith.constant dense<0.000000e+00> : vector<16x512xf32>
    %176 = tpu.matmul %174, %175, %cst_48 {dimension_numbers = #tpu.dot_dimension_numbers<[1], [0], [0], [1], [0, 0, 1, 1], [], []>} : vector<16x128xbf16>, vector<128x512xbf16>, vector<16x512xf32> -> vector<16x512xf32>
    %177 = arith.addf %173, %176 : vector<16x512xf32>
    %178 = vector.extract_strided_slice %177 {offsets = [0, 0], sizes = [16, 128], strides = [1, 1]} : vector<16x512xf32> to vector<16x128xf32>
    %179 = arith.negf %178 : vector<16x128xf32>
    %180 = math.exp %179 : vector<16x128xf32>
    %cst_49 = arith.constant 1.000000e+00 : f32
    %181 = vector.broadcast %cst_49 : f32 to vector<16x128xf32>
    %182 = arith.addf %181, %180 : vector<16x128xf32>
    %183 = arith.divf %181, %182 : vector<16x128xf32>
    %184 = vector.extract_strided_slice %177 {offsets = [0, 128], sizes = [16, 128], strides = [1, 1]} : vector<16x512xf32> to vector<16x128xf32>
    %185 = arith.negf %184 : vector<16x128xf32>
    %186 = math.exp %185 : vector<16x128xf32>
    %cst_50 = arith.constant 1.000000e+00 : f32
    %187 = vector.broadcast %cst_50 : f32 to vector<16x128xf32>
    %188 = arith.addf %187, %186 : vector<16x128xf32>
    %189 = arith.divf %187, %188 : vector<16x128xf32>
    %190 = vector.extract_strided_slice %177 {offsets = [0, 256], sizes = [16, 128], strides = [1, 1]} : vector<16x512xf32> to vector<16x128xf32>
    %191 = math.tanh %190 : vector<16x128xf32>
    %192 = vector.extract_strided_slice %177 {offsets = [0, 384], sizes = [16, 128], strides = [1, 1]} : vector<16x512xf32> to vector<16x128xf32>
    %193 = arith.negf %192 : vector<16x128xf32>
    %194 = math.exp %193 : vector<16x128xf32>
    %cst_51 = arith.constant 1.000000e+00 : f32
    %195 = vector.broadcast %cst_51 : f32 to vector<16x128xf32>
    %196 = arith.addf %195, %194 : vector<16x128xf32>
    %197 = arith.divf %195, %196 : vector<16x128xf32>
    %198 = arith.mulf %189, %167 : vector<16x128xf32>
    %199 = arith.mulf %183, %191 : vector<16x128xf32>
    %200 = arith.addf %198, %199 : vector<16x128xf32>
    %201 = math.tanh %200 : vector<16x128xf32>
    %202 = arith.mulf %197, %201 : vector<16x128xf32>
    %c6_i32 = arith.constant 6 : i32
    %203 = arith.index_cast %c6_i32 : i32 to index
    %c0_52 = arith.constant 0 : index
    %c0_53 = arith.constant 0 : index
    %204 = vector.load %arg2[%203, %c0_52, %c0_53] : memref<8x16x512xbf16, #tpu.memory_space<vmem>>, vector<1x16x512xbf16>
    %205 = vector.shape_cast %204 : vector<1x16x512xbf16> to vector<16x512xbf16>
    %206 = arith.extf %205 : vector<16x512xbf16> to vector<16x512xf32>
    %207 = arith.truncf %202 : vector<16x128xf32> to vector<16x128xbf16>
    %c0_54 = arith.constant 0 : index
    %c0_55 = arith.constant 0 : index
    %208 = vector.load %arg3[%c0_54, %c0_55] : memref<128x512xbf16, #tpu.memory_space<vmem>>, vector<128x512xbf16>
    %cst_56 = arith.constant dense<0.000000e+00> : vector<16x512xf32>
    %209 = tpu.matmul %207, %208, %cst_56 {dimension_numbers = #tpu.dot_dimension_numbers<[1], [0], [0], [1], [0, 0, 1, 1], [], []>} : vector<16x128xbf16>, vector<128x512xbf16>, vector<16x512xf32> -> vector<16x512xf32>
    %210 = arith.addf %206, %209 : vector<16x512xf32>
    %211 = vector.extract_strided_slice %210 {offsets = [0, 0], sizes = [16, 128], strides = [1, 1]} : vector<16x512xf32> to vector<16x128xf32>
    %212 = arith.negf %211 : vector<16x128xf32>
    %213 = math.exp %212 : vector<16x128xf32>
    %cst_57 = arith.constant 1.000000e+00 : f32
    %214 = vector.broadcast %cst_57 : f32 to vector<16x128xf32>
    %215 = arith.addf %214, %213 : vector<16x128xf32>
    %216 = arith.divf %214, %215 : vector<16x128xf32>
    %217 = vector.extract_strided_slice %210 {offsets = [0, 128], sizes = [16, 128], strides = [1, 1]} : vector<16x512xf32> to vector<16x128xf32>
    %218 = arith.negf %217 : vector<16x128xf32>
    %219 = math.exp %218 : vector<16x128xf32>
    %cst_58 = arith.constant 1.000000e+00 : f32
    %220 = vector.broadcast %cst_58 : f32 to vector<16x128xf32>
    %221 = arith.addf %220, %219 : vector<16x128xf32>
    %222 = arith.divf %220, %221 : vector<16x128xf32>
    %223 = vector.extract_strided_slice %210 {offsets = [0, 256], sizes = [16, 128], strides = [1, 1]} : vector<16x512xf32> to vector<16x128xf32>
    %224 = math.tanh %223 : vector<16x128xf32>
    %225 = vector.extract_strided_slice %210 {offsets = [0, 384], sizes = [16, 128], strides = [1, 1]} : vector<16x512xf32> to vector<16x128xf32>
    %226 = arith.negf %225 : vector<16x128xf32>
    %227 = math.exp %226 : vector<16x128xf32>
    %cst_59 = arith.constant 1.000000e+00 : f32
    %228 = vector.broadcast %cst_59 : f32 to vector<16x128xf32>
    %229 = arith.addf %228, %227 : vector<16x128xf32>
    %230 = arith.divf %228, %229 : vector<16x128xf32>
    %231 = arith.mulf %222, %200 : vector<16x128xf32>
    %232 = arith.mulf %216, %224 : vector<16x128xf32>
    %233 = arith.addf %231, %232 : vector<16x128xf32>
    %234 = math.tanh %233 : vector<16x128xf32>
    %235 = arith.mulf %230, %234 : vector<16x128xf32>
    %c7_i32 = arith.constant 7 : i32
    %236 = arith.index_cast %c7_i32 : i32 to index
    %c0_60 = arith.constant 0 : index
    %c0_61 = arith.constant 0 : index
    %237 = vector.load %arg2[%236, %c0_60, %c0_61] : memref<8x16x512xbf16, #tpu.memory_space<vmem>>, vector<1x16x512xbf16>
    %238 = vector.shape_cast %237 : vector<1x16x512xbf16> to vector<16x512xbf16>
    %239 = arith.extf %238 : vector<16x512xbf16> to vector<16x512xf32>
    %240 = arith.truncf %235 : vector<16x128xf32> to vector<16x128xbf16>
    %c0_62 = arith.constant 0 : index
    %c0_63 = arith.constant 0 : index
    %241 = vector.load %arg3[%c0_62, %c0_63] : memref<128x512xbf16, #tpu.memory_space<vmem>>, vector<128x512xbf16>
    %cst_64 = arith.constant dense<0.000000e+00> : vector<16x512xf32>
    %242 = tpu.matmul %240, %241, %cst_64 {dimension_numbers = #tpu.dot_dimension_numbers<[1], [0], [0], [1], [0, 0, 1, 1], [], []>} : vector<16x128xbf16>, vector<128x512xbf16>, vector<16x512xf32> -> vector<16x512xf32>
    %243 = arith.addf %239, %242 : vector<16x512xf32>
    %244 = vector.extract_strided_slice %243 {offsets = [0, 0], sizes = [16, 128], strides = [1, 1]} : vector<16x512xf32> to vector<16x128xf32>
    %245 = arith.negf %244 : vector<16x128xf32>
    %246 = math.exp %245 : vector<16x128xf32>
    %cst_65 = arith.constant 1.000000e+00 : f32
    %247 = vector.broadcast %cst_65 : f32 to vector<16x128xf32>
    %248 = arith.addf %247, %246 : vector<16x128xf32>
    %249 = arith.divf %247, %248 : vector<16x128xf32>
    %250 = vector.extract_strided_slice %243 {offsets = [0, 128], sizes = [16, 128], strides = [1, 1]} : vector<16x512xf32> to vector<16x128xf32>
    %251 = arith.negf %250 : vector<16x128xf32>
    %252 = math.exp %251 : vector<16x128xf32>
    %cst_66 = arith.constant 1.000000e+00 : f32
    %253 = vector.broadcast %cst_66 : f32 to vector<16x128xf32>
    %254 = arith.addf %253, %252 : vector<16x128xf32>
    %255 = arith.divf %253, %254 : vector<16x128xf32>
    %256 = vector.extract_strided_slice %243 {offsets = [0, 256], sizes = [16, 128], strides = [1, 1]} : vector<16x512xf32> to vector<16x128xf32>
    %257 = math.tanh %256 : vector<16x128xf32>
    %258 = vector.extract_strided_slice %243 {offsets = [0, 384], sizes = [16, 128], strides = [1, 1]} : vector<16x512xf32> to vector<16x128xf32>
    %259 = arith.negf %258 : vector<16x128xf32>
    %260 = math.exp %259 : vector<16x128xf32>
    %cst_67 = arith.constant 1.000000e+00 : f32
    %261 = vector.broadcast %cst_67 : f32 to vector<16x128xf32>
    %262 = arith.addf %261, %260 : vector<16x128xf32>
    %263 = arith.divf %261, %262 : vector<16x128xf32>
    %264 = arith.mulf %255, %233 : vector<16x128xf32>
    %265 = arith.mulf %249, %257 : vector<16x128xf32>
    %266 = arith.addf %264, %265 : vector<16x128xf32>
    %267 = math.tanh %266 : vector<16x128xf32>
    %268 = arith.mulf %263, %267 : vector<16x128xf32>
    %c8_i32 = arith.constant 8 : i32
    %c0_68 = arith.constant 0 : index
    %c0_69 = arith.constant 0 : index
    %269 = vector.load %arg5[%c0_68, %c0_69] : memref<16x128xf32, #tpu.memory_space<vmem>>, vector<16x128xf32>
    tpu.vector_store %arg5[%c0_68, %c0_69], %268 {strides = array<i32>} : memref<16x128xf32, #tpu.memory_space<vmem>>, vector<16x128xf32>,
    %c0_70 = arith.constant 0 : index
    %c0_71 = arith.constant 0 : index
    %270 = vector.load %arg6[%c0_70, %c0_71] : memref<16x128xf32, #tpu.memory_space<vmem>>, vector<16x128xf32>
    tpu.vector_store %arg6[%c0_70, %c0_71], %266 {strides = array<i32>} : memref<16x128xf32, #tpu.memory_space<vmem>>, vector<16x128xf32>,
    %c0_i32_72 = arith.constant 0 : i32
    %271 = arith.cmpi eq, %arg1, %c0_i32_72 : i32
    %272 = arith.extui %271 : i1 to i32
    %c0_i32_73 = arith.constant 0 : i32
    %273 = arith.cmpi ne, %272, %c0_i32_73 : i32
    scf.if %273 {
      %c0_74 = arith.constant 0 : index
      %c0_75 = arith.constant 0 : index
      %274 = vector.load %arg4[%c0_74, %c0_75] : memref<16x128xf32, #tpu.memory_space<vmem>>, vector<16x128xf32>
      tpu.vector_store %arg4[%c0_74, %c0_75], %268 {strides = array<i32>} : memref<16x128xf32, #tpu.memory_space<vmem>>, vector<16x128xf32>,
    } else {
    }
    return
  }
  func.func @transform_0(%arg0: i32, %arg1: i32) -> (i32, i32, i32) {
    %c0_i32 = arith.constant 0 : i32
    %c0_i32_0 = arith.constant 0 : i32
    return %arg1, %arg0, %c0_i32 : i32, i32, i32
  }
  func.func @transform_1(%arg0: i32, %arg1: i32) -> (i32, i32) {
    %c0_i32 = arith.constant 0 : i32
    %c0_i32_0 = arith.constant 0 : i32
    %c0_i32_1 = arith.constant 0 : i32
    return %c0_i32, %c0_i32_0 : i32, i32
  }
  func.func @transform_2(%arg0: i32, %arg1: i32) -> (i32, i32) {
    %c0_i32 = arith.constant 0 : i32
    %c0_i32_0 = arith.constant 0 : i32
    return %arg0, %c0_i32 : i32, i32
  }
}

</mosaic_0001>

<bundles_post_ra>
// kernel: tpu_custom_call.1
= control target key start
LH: loop header
LB: loop body
LE: loop exit
PB: predicated region body
PF: predicated region fallthrough
CT: control target
= control target key end

     0   :  { %7 = vsyncpa [#allocation5], 0  ;;  %s2499_s0 = inlined_call_operand.hbm [shape: bf16[8,16,512], index: 0, kind: input, shape index: {}]   ;;  %s2500_s1 = inlined_call_operand.hbm [shape: bf16[128,512], index: 1, kind: input, shape index: {}]   ;;  %s2501_s2 = inlined_call_operand.hbm [shape: f32[16,128], index: 2, kind: output, shape index: {}]  }
   0x1   :  { %8 = vsyncpa [#allocation8], 0 }
   0x2   :  { %9 = vsyncpa [#allocation6], 0  ;;  %s2010_s9 = smov [#allocation4]  }
   0x3   :  { %s15_s10 = sshll.u32 %s2010_s9, 4  ;;  %s16_s10 = int_to_ptr.vmem [resolvable:$true] %s15_s10 }
   0x4   :  { %s1952_s11 = scalar_lea.vmem %s16_s10, 4096  ;;  %p1957_p1 = scmp.lt.s32.totalorder %s16_s10, %s16_s10 }
   0x5   :  { %p1953_p0 = scmp.ne.s32.totalorder %s16_s10, %s1952_s11  ;;  %p1958_p2 = scmp.lt.s32.totalorder %s1952_s11, %s1952_s11 }
   0x7   :  { %p1959_p3 = por %p1958_p2, %p1957_p1 }
   0x9   :  { %p1960_p4 = pnand %p1959_p3, %p1953_p0 }
   0xb   :  { %1963 = shalt.err (!%p1960_p4)
}
   0xc   :  { %s2011_s12 = smov 256   ;;  %s2012_s13 = smov 16  }
   0xd   :  { %21 = dma.hbm_to_vmem [thread:$0]  %s2499_s0, 4096, %s16_s10, [#allocation5], %s2011_s12, %s2011_s12, %s2012_s13  }
   0xe   :  { %s2013_s16 = smov [#allocation7]  }
   0xf   :  { %s27_s17 = sshll.u32 %s2013_s16, 4  ;;  %s28_s17 = int_to_ptr.vmem [resolvable:$true] %s27_s17 }
  0x10   :  { %s1972_s18 = scalar_lea.vmem %s28_s17, 4096  ;;  %p1977_p6 = scmp.lt.s32.totalorder %s28_s17, %s28_s17 }
  0x11   :  { %p1973_p5 = scmp.ne.s32.totalorder %s28_s17, %s1972_s18  ;;  %p1978_p7 = scmp.lt.s32.totalorder %s1972_s18, %s1972_s18 }
  0x13   :  { %p1979_p8 = por %p1978_p7, %p1977_p6 }
  0x15   :  { %p1980_p9 = pnand %p1979_p8, %p1973_p5 }
  0x17   :  { %1983 = shalt.err (!%p1980_p9)
}
  0x18   :  { %33 = dma.hbm_to_vmem [thread:$0]  %s2500_s1, 4096, %s28_s17, [#allocation8], %s2011_s12, %s2011_s12, %s2012_s13  }
  0x19   :  { %2004 = dma.done.wait [#allocation5], 4096  }
  0x1a   :  { %2005 = vsyncadd [#allocation5], 4294963200 }
  0x1b   :  { %2006 = dma.done.wait [#allocation8], 4096  }
  0x1c   :  { %2007 = vsyncadd [#allocation8], 4294963200  ;;  %v2014_v0 = vmov 0   ;;  %v2042_v1 = vld [vmem:[#allocation7 + $0xe4] ss:$16 sps:$4 sm:$0xff]   ;;  %v2015_v33 = vmov 0.0|0.0  }
  0x1d   :  { %290 = vmatprep.mubr.bf16.mxu0 %v2014_v0  ;;  %333 = vmatprep.mubr.bf16.mxu1 %v2014_v0  ;;  %v2044_v2 = vld [vmem:[#allocation7 + $0xe0] ss:$16 sps:$4 sm:$0xff]   ;;  %v2047_v3 = vld [vmem:[#allocation7 + $0xc4] ss:$16 sps:$4 sm:$0xff]   ;;  %v2055_v6 = vld [vmem:[#allocation7 + $0xec] ss:$16 sps:$4 sm:$0xff]  }
  0x1e   :  { %258 = vmatprep.subr.bf16.mxu0 %v2042_v1  ;;  %v2050_v4 = vld [vmem:[#allocation7 + $0xc0] ss:$16 sps:$4 sm:$0xff]   ;;  %v2053_v5 = vld [vmem:[#allocation7 + $0xa4] ss:$16 sps:$4 sm:$0xff]   ;;  %v2057_v7 = vld [vmem:[#allocation7 + $0xe8] ss:$16 sps:$4 sm:$0xff]   ;;  %301 = vmatprep.subr.bf16.mxu1 %v2055_v6 }
  0x1f   :  { %259 = vmatpush1.bf16.msra.mxu0 %v2044_v2  ;;  %v2060_v8 = vld [vmem:[#allocation7 + $0xa0] ss:$16 sps:$4 sm:$0xff]   ;;  %v2064_v9 = vld [vmem:[#allocation7 + $0x84] ss:$16 sps:$4 sm:$0xff]   ;;  %302 = vmatpush1.bf16.msra.mxu1 %v2057_v7  ;;  %v2067_v10 = vld [vmem:[#allocation7 + $0xcc] ss:$16 sps:$4 sm:$0xff]  }
  0x20   :  { %260 = vmatprep.subr.bf16.mxu0 %v2047_v3  ;;  %v2069_v11 = vld [vmem:[#allocation7 + $0xc8] ss:$16 sps:$4 sm:$0xff]   ;;  %303 = vmatprep.subr.bf16.mxu1 %v2067_v10  ;;  %v2073_v12 = vld [vmem:[#allocation7 + $0x80] ss:$16 sps:$4 sm:$0xff]   ;;  %v2075_v13 = vld [vmem:[#allocation7 + $0x64] ss:$16 sps:$4 sm:$0xff]  }
  0x21   :  { %v2077_v14 = vld [vmem:[#allocation7 + $0xac] ss:$16 sps:$4 sm:$0xff]   ;;  %v2081_v15 = vld [vmem:[#allocation7 + $0xa8] ss:$16 sps:$4 sm:$0xff]   ;;  %v2087_v17 = vld [vmem:[#allocation7 + $0x60] ss:$16 sps:$4 sm:$0xff]  }
  0x22   :  { %v2084_v16 = vld [vmem:[#allocation7 + $0x8c] ss:$16 sps:$4 sm:$0xff]   ;;  %v2090_v18 = vld [vmem:[#allocation7 + $0x44] ss:$16 sps:$4 sm:$0xff]   ;;  %v2093_v19 = vld [vmem:[#allocation7 + $0x88] ss:$16 sps:$4 sm:$0xff]  }
  0x23   :  { %261 = vmatpush1.bf16.msra.mxu0 %v2050_v4  ;;  %304 = vmatpush1.bf16.msra.mxu1 %v2069_v11  ;;  %v2096_v20 = vld [vmem:[#allocation7 + $0x6c] ss:$16 sps:$4 sm:$0xff]   ;;  %v2099_v21 = vld [vmem:[#allocation7 + $0x40] ss:$16 sps:$4 sm:$0xff]   ;;  %v2101_v22 = vld [vmem:[#allocation7 + $0x24] ss:$16 sps:$4 sm:$0xff]  }
  0x24   :  { %262 = vmatprep.subr.bf16.mxu0 %v2053_v5  ;;  %305 = vmatprep.subr.bf16.mxu1 %v2077_v14  ;;  %v2105_v23 = vld [vmem:[#allocation7 + $0x68] ss:$16 sps:$4 sm:$0xff]   ;;  %v2108_v24 = vld [vmem:[#allocation7 + $0x4c] ss:$16 sps:$4 sm:$0xff]   ;;  %v2111_v25 = vld [vmem:[#allocation7 + $0x20] ss:$16 sps:$4 sm:$0xff]  }
  0x25   :  { %v2114_v26 = vld [vmem:[#allocation7 + $0x4] ss:$16 sps:$4 sm:$0xff]   ;;  %v2117_v27 = vld [vmem:[#allocation7 + $0x48] ss:$16 sps:$4 sm:$0xff]   ;;  %v2120_v28 = vld [vmem:[#allocation7 + $0x2c] ss:$16 sps:$4 sm:$0xff]  }
  0x26   :  { %v2123_v29 = vld [vmem:[#allocation7] ss:$16 sps:$4 sm:$0xff]   ;;  %v2127_v30 = vld [vmem:[#allocation7 + $0x28] ss:$16 sps:$4 sm:$0xff]   ;;  %v2130_v31 = vld [vmem:[#allocation7 + $0xc] ss:$16 sps:$4 sm:$0xff]  }
  0x27   :  { %263 = vmatpush1.bf16.msra.mxu0 %v2060_v8  ;;  %306 = vmatpush1.bf16.msra.mxu1 %v2081_v15  ;;  %v2134_v32 = vld [vmem:[#allocation7 + $0x8] ss:$16 sps:$4 sm:$0xff]   ;;  %v53_v34 = vld [vmem:[#allocation4] sm:$0xff]  ;;  %v55_v36 = vld [vmem:[#allocation4 + $0x10] sm:$0xff]  ;;  %s2016_s0 = smov [#allocation9]  }
  0x28   :  { %264 = vmatprep.subr.bf16.mxu0 %v2064_v9  ;;  %307 = vmatprep.subr.bf16.mxu1 %v2084_v16  ;;  %v57_v35 = vunpack.c.l.bf16 %v53_v34  ;;  %v58_v37 = vunpack.c.h.bf16 %v53_v34  ;;  %v61_v40 = vunpack.c.l.bf16 %v55_v36  ;;  %v62_v44 = vunpack.c.h.bf16 %v55_v36  ;;  %v54_v52 = vld [vmem:[#allocation4 + $0x8] sm:$0xff]  ;;  %v56_v55 = vld [vmem:[#allocation4 + $0x18] sm:$0xff]  ;;  %s1506_s1 = sshll.u32 %s2016_s0, 4  ;;  %s1507_s1 = int_to_ptr.vmem [resolvable:$true] %s1506_s1 }
  0x29   :  { %v60_v57 = vunpack.c.h.bf16 %v54_v52  ;;  %v59_v58 = vunpack.c.l.bf16 %v54_v52  ;;  %v64_v59 = vunpack.c.h.bf16 %v56_v55  ;;  %s1984_s21 = scalar_lea.vmem %s1507_s1, 256  ;;  %p1989_p11 = scmp.lt.s32.totalorder %s1507_s1, %s1507_s1 }
  0x2a   :  { %p1985_p10 = scmp.ne.s32.totalorder %s1507_s1, %s1984_s21  ;;  %p1990_p12 = scmp.lt.s32.totalorder %s1984_s21, %s1984_s21 }
  0x2b   :  { %265 = vmatpush1.bf16.msra.mxu0 %v2073_v12  ;;  %308 = vmatpush1.bf16.msra.mxu1 %v2093_v19 }
  0x2c   :  { %266 = vmatprep.subr.bf16.mxu0 %v2075_v13  ;;  %309 = vmatprep.subr.bf16.mxu1 %v2096_v20  ;;  %p1991_p13 = por %p1990_p12, %p1989_p11 }
  0x2e   :  { %p1992_p0 = pnand %p1991_p13, %p1985_p10 }
  0x2f   :  { %267 = vmatpush1.bf16.msra.mxu0 %v2087_v17  ;;  %310 = vmatpush1.bf16.msra.mxu1 %v2105_v23 }
  0x30   :  { %268 = vmatprep.subr.bf16.mxu0 %v2090_v18  ;;  %311 = vmatprep.subr.bf16.mxu1 %v2108_v24 }
  0x33   :  { %269 = vmatpush1.bf16.msra.mxu0 %v2099_v21  ;;  %312 = vmatpush1.bf16.msra.mxu1 %v2117_v27 }
  0x34   :  { %270 = vmatprep.subr.bf16.mxu0 %v2101_v22  ;;  %313 = vmatprep.subr.bf16.mxu1 %v2120_v28 }
  0x37   :  { %271 = vmatpush1.bf16.msra.mxu0 %v2111_v25  ;;  %314 = vmatpush1.bf16.msra.mxu1 %v2127_v30 }
  0x38   :  { %272 = vmatprep.subr.bf16.mxu0 %v2114_v26  ;;  %315 = vmatprep.subr.bf16.mxu1 %v2130_v31 }
  0x3b   :  { %273 = vmatpush1.bf16.msra.mxu0 %v2123_v29  ;;  %316 = vmatpush1.bf16.msra.mxu1 %v2134_v32 }
  0x3c   :  { %414 = vmatprep.subr.bf16.mxu0 %v2042_v1  ;;  %457 = vmatprep.subr.bf16.mxu1 %v2055_v6 }
  0x3e   :  { %291 = vmatmul.mubr.bf16.vlgmr.msra.gmra.mxu0 %v2015_v33  ;;  %334 = vmatmul.mubr.bf16.vlgmr.msra.gmra.mxu1 %v2015_v33 }
  0x3f   :  { %415 = vmatpush1.bf16.msra.mxu0 %v2044_v2  ;;  %446 = vmatprep.mubr.bf16.mxu0 %v2014_v0 }
  0x40   :  { %416 = vmatprep.subr.bf16.mxu0 %v2047_v3  ;;  %458 = vmatpush1.bf16.msra.mxu1 %v2057_v7 }
  0x41   :  { %459 = vmatprep.subr.bf16.mxu1 %v2067_v10  ;;  %489 = vmatprep.mubr.bf16.mxu1 %v2014_v0 }
  0x43   :  { %417 = vmatpush1.bf16.msra.mxu0 %v2050_v4 }
  0x44   :  { %418 = vmatprep.subr.bf16.mxu0 %v2053_v5  ;;  %460 = vmatpush1.bf16.msra.mxu1 %v2069_v11 }
  0x45   :  { %461 = vmatprep.subr.bf16.mxu1 %v2077_v14 }
  0x47   :  { %419 = vmatpush1.bf16.msra.mxu0 %v2060_v8 }
  0x48   :  { %420 = vmatprep.subr.bf16.mxu0 %v2064_v9  ;;  %462 = vmatpush1.bf16.msra.mxu1 %v2081_v15 }
  0x49   :  { %463 = vmatprep.subr.bf16.mxu1 %v2084_v16 }
  0x4b   :  { %421 = vmatpush1.bf16.msra.mxu0 %v2073_v12 }
  0x4c   :  { %422 = vmatprep.subr.bf16.mxu0 %v2075_v13  ;;  %464 = vmatpush1.bf16.msra.mxu1 %v2093_v19 }
  0x4d   :  { %465 = vmatprep.subr.bf16.mxu1 %v2096_v20 }
  0x4f   :  { %423 = vmatpush1.bf16.msra.mxu0 %v2087_v17 }
  0x50   :  { %424 = vmatprep.subr.bf16.mxu0 %v2090_v18  ;;  %466 = vmatpush1.bf16.msra.mxu1 %v2105_v23 }
  0x51   :  { %467 = vmatprep.subr.bf16.mxu1 %v2108_v24 }
  0x53   :  { %425 = vmatpush1.bf16.msra.mxu0 %v2099_v21 }
  0x54   :  { %426 = vmatprep.subr.bf16.mxu0 %v2101_v22  ;;  %468 = vmatpush1.bf16.msra.mxu1 %v2117_v27 }
  0x55   :  { %469 = vmatprep.subr.bf16.mxu1 %v2120_v28 }
  0x57   :  { %427 = vmatpush1.bf16.msra.mxu0 %v2111_v25 }
  0x58   :  { %428 = vmatprep.subr.bf16.mxu0 %v2114_v26  ;;  %470 = vmatpush1.bf16.msra.mxu1 %v2127_v30 }
  0x59   :  { %471 = vmatprep.subr.bf16.mxu1 %v2130_v31 }
  0x5b   :  { %429 = vmatpush1.bf16.msra.mxu0 %v2123_v29 }
  0x5c   :  { %570 = vmatprep.subr.bf16.mxu0 %v2042_v1  ;;  %472 = vmatpush1.bf16.msra.mxu1 %v2134_v32 }
  0x5d   :  { %613 = vmatprep.subr.bf16.mxu1 %v2055_v6 }
  0xfe   :  { %v292_v38 = vpop.f32.mrf.mxu0  ;;  %v335_v48 = vpop.f32.mrf.mxu1 }
  0xff   :  { %v344_v39 = vadd.f32 %v292_v38, %v57_v35  ;;  %v346_v62 = vadd.f32 %v335_v48, %v59_v58  ;;  %v63_v35 = vunpack.c.l.bf16 %v56_v55 }
 0x100   :  { %v294_v41 = vpop.f32.mrf.mxu0  ;;  %v337_v53 = vpop.f32.mrf.mxu1 }
 0x101   :  { %v1551_v42 = vmul.f32 -1.442695, %v344_v39  ;;  %v345_v43 = vadd.f32 %v294_v41, %v58_v37  ;;  %v347_v61 = vadd.f32 %v337_v53, %v60_v57 }
 0x102   :  { %v296_v45 = vpop.f32.mrf.mxu0  ;;  %v339_v56 = vpop.f32.mrf.mxu1 }
 0x103   :  { %1656 = vpow2.f32 %v1551_v42  ;;  %v1553_v46 = vmul.f32 -1.442695, %v345_v43  ;;  %v348_v47 = vadd.f32 %v296_v45, %v61_v40  ;;  %v1555_v34 = vmul.f32 -1.442695, %v347_v61 }
 0x104   :  { %v298_v49 = vpop.f32.mrf.mxu0  ;;  %v341_v60 = vpop.f32.mrf.mxu1  ;;  %v350_v41 = vadd.f32 %v339_v56, %v63_v35 }
 0x105   :  { %1658 = vpow2.f32 %v1553_v46  ;;  %v1552_v50 = vmul.f32 -1.442695, %v348_v47  ;;  %v349_v51 = vadd.f32 %v298_v49, %v62_v44  ;;  %v351_v63 = vadd.f32 %v341_v60, %v64_v59 }
 0x107   :  { %1660 = vpow2.f32 %v1552_v50  ;;  %v1554_v54 = vmul.f32 -1.442695, %v349_v51  ;;  %v1556_v38 = vmul.f32 -1.442695, %v351_v63 }
 0x109   :  { %1662 = vpow2.f32 %v1554_v54 }
 0x10a   :  { %1664 = vtanh.f32 %v346_v62 }
 0x110   :  { %v1657_v33 = vpop.eup %1656 }
 0x111   :  { %v358_v36 = vadd.f32 1.0, %v1657_v33 }
 0x112   :  { %v1659_v37 = vpop.eup %1658 }
 0x113   :  { %1666 = vrcp.f32 %v358_v36  ;;  %v370_v39 = vadd.f32 1.0, %v1659_v37  ;;  %v401_v37 = vld [vmem:[#allocation4 + $0x20] sm:$0xff] }
 0x114   :  { %v1661_v40 = vpop.eup %1660  ;;  %1668 = vpow2.f32 %v1555_v34 }
 0x115   :  { %1670 = vrcp.f32 %v370_v39  ;;  %v359_v42 = vadd.f32 1.0, %v1661_v40  ;;  %v403_v39 = vld [vmem:[#allocation4 + $0x30] sm:$0xff]  ;;  %v406_v40 = vunpack.c.h.bf16 %v401_v37 }
 0x116   :  { %v1663_v43 = vpop.eup %1662  ;;  %1672 = vpow2.f32 %v1556_v38  ;;  %v405_v38 = vunpack.c.l.bf16 %v401_v37 }
 0x117   :  { %1674 = vrcp.f32 %v359_v42  ;;  %v371_v44 = vadd.f32 1.0, %v1663_v43  ;;  %v1665_v45 = vpop.eup %1664 }
 0x118   :  { %1676 = vtanh.f32 %v350_v41 }
 0x119   :  { %1678 = vrcp.f32 %v371_v44  ;;  %v409_v44 = vunpack.c.l.bf16 %v403_v39 }
 0x120   :  { %v1667_v46 = vpop.eup %1666 }
 0x121   :  { %v1669_v47 = vpop.eup %1668  ;;  %v392_v51 = vmul.f32 %v1667_v46, %v1665_v45 }
 0x122   :  { %v1671_v48 = vpop.eup %1670  ;;  %v384_v53 = vadd.f32 1.0, %v1669_v47 }
 0x123   :  { %v1673_v49 = vpop.eup %1672  ;;  %v390_v50 = vmul.f32 0.0, %v1671_v48  ;;  %v410_v48 = vunpack.c.h.bf16 %v403_v39 }
 0x124   :  { %v1675_v52 = vpop.eup %1674  ;;  %v385_v57 = vadd.f32 1.0, %v1673_v49  ;;  %1680 = vrcp.f32 %v384_v53 }
 0x125   :  { %v1677_v54 = vpop.eup %1676  ;;  %v2174_v55 = vadd.f32 %v392_v51, %v390_v50 }
 0x126   :  { %v1679_v56 = vpop.eup %1678  ;;  %v393_v59 = vmul.f32 %v1677_v54, %v1675_v52 }
 0x127   :  { %v391_v58 = vmul.f32 0.0, %v1679_v56  ;;  %1682 = vtanh.f32 %v2174_v55 }
 0x128   :  { %1684 = vrcp.f32 %v385_v57  ;;  %v402_v57 = vld [vmem:[#allocation4 + $0x28] sm:$0xff] }
 0x129   :  { %v2177_v60 = vadd.f32 %v393_v59, %v391_v58 }
 0x12b   :  { %1686 = vtanh.f32 %v2177_v60 }
 0x131   :  { %v1681_v61 = vpop.eup %1680 }
 0x134   :  { %v1683_v62 = vpop.eup %1682 }
 0x135   :  { %v1685_v63 = vpop.eup %1684  ;;  %v398_v34 = vmul.f32 %v1683_v62, %v1681_v61  ;;  %v408_v61 = vunpack.c.h.bf16 %v402_v57  ;;  %v404_v62 = vld [vmem:[#allocation4 + $0x38] sm:$0xff] }
 0x138   :  { %v1687_v33 = vpop.eup %1686 }
 0x139   :  { %v399_v35 = vmul.f32 %v1687_v33, %v1685_v63  ;;  %v407_v63 = vunpack.c.l.bf16 %v402_v57  ;;  %v412_v33 = vunpack.c.h.bf16 %v404_v62 }
 0x13b   :  { %v413_v36 = vpack.c.bf16 %v399_v35, %v398_v34 }
 0x13d   :  { %447 = vmatmul.mubr.bf16.vlgmr.msra.gmra.mxu0 %v413_v36  ;;  %490 = vmatmul.mubr.bf16.vlgmr.msra.gmra.mxu1 %v413_v36 }
 0x13e   :  { %571 = vmatpush1.bf16.msra.mxu0 %v2044_v2  ;;  %614 = vmatpush1.bf16.msra.mxu1 %v2057_v7 }
 0x13f   :  { %572 = vmatprep.subr.bf16.mxu0 %v2047_v3  ;;  %615 = vmatprep.subr.bf16.mxu1 %v2067_v10 }
 0x140   :  { %602 = vmatprep.mubr.bf16.mxu0 %v2014_v0  ;;  %645 = vmatprep.mubr.bf16.mxu1 %v2014_v0 }
 0x142   :  { %573 = vmatpush1.bf16.msra.mxu0 %v2050_v4  ;;  %616 = vmatpush1.bf16.msra.mxu1 %v2069_v11 }
 0x143   :  { %574 = vmatprep.subr.bf16.mxu0 %v2053_v5  ;;  %617 = vmatprep.subr.bf16.mxu1 %v2077_v14 }
 0x146   :  { %575 = vmatpush1.bf16.msra.mxu0 %v2060_v8  ;;  %618 = vmatpush1.bf16.msra.mxu1 %v2081_v15 }
 0x147   :  { %576 = vmatprep.subr.bf16.mxu0 %v2064_v9  ;;  %619 = vmatprep.subr.bf16.mxu1 %v2084_v16 }
 0x14a   :  { %577 = vmatpush1.bf16.msra.mxu0 %v2073_v12  ;;  %620 = vmatpush1.bf16.msra.mxu1 %v2093_v19 }
 0x14b   :  { %578 = vmatprep.subr.bf16.mxu0 %v2075_v13  ;;  %621 = vmatprep.subr.bf16.mxu1 %v2096_v20 }
 0x14e   :  { %579 = vmatpush1.bf16.msra.mxu0 %v2087_v17  ;;  %622 = vmatpush1.bf16.msra.mxu1 %v2105_v23 }
 0x14f   :  { %580 = vmatprep.subr.bf16.mxu0 %v2090_v18  ;;  %623 = vmatprep.subr.bf16.mxu1 %v2108_v24 }
 0x152   :  { %581 = vmatpush1.bf16.msra.mxu0 %v2099_v21  ;;  %624 = vmatpush1.bf16.msra.mxu1 %v2117_v27 }
 0x153   :  { %582 = vmatprep.subr.bf16.mxu0 %v2101_v22  ;;  %625 = vmatprep.subr.bf16.mxu1 %v2120_v28 }
 0x156   :  { %583 = vmatpush1.bf16.msra.mxu0 %v2111_v25  ;;  %626 = vmatpush1.bf16.msra.mxu1 %v2127_v30 }
 0x157   :  { %584 = vmatprep.subr.bf16.mxu0 %v2114_v26  ;;  %627 = vmatprep.subr.bf16.mxu1 %v2130_v31 }
 0x15a   :  { %585 = vmatpush1.bf16.msra.mxu0 %v2123_v29  ;;  %628 = vmatpush1.bf16.msra.mxu1 %v2134_v32 }
 0x15b   :  { %726 = vmatprep.subr.bf16.mxu0 %v2042_v1  ;;  %769 = vmatprep.subr.bf16.mxu1 %v2055_v6 }
 0x1fd   :  { %v448_v41 = vpop.f32.mrf.mxu0  ;;  %v491_v43 = vpop.f32.mrf.mxu1 }
 0x1fe   :  { %v500_v42 = vadd.f32 %v448_v41, %v405_v38  ;;  %v502_v36 = vadd.f32 %v491_v43, %v407_v63 }
 0x1ff   :  { %v450_v45 = vpop.f32.mrf.mxu0  ;;  %v493_v51 = vpop.f32.mrf.mxu1 }
 0x200   :  { %v1557_v46 = vmul.f32 -1.442695, %v500_v42  ;;  %v501_v47 = vadd.f32 %v450_v45, %v406_v40  ;;  %v503_v35 = vadd.f32 %v493_v51, %v408_v61  ;;  %v411_v40 = vunpack.c.l.bf16 %v404_v62 }
 0x201   :  { %v452_v49 = vpop.f32.mrf.mxu0  ;;  %v495_v58 = vpop.f32.mrf.mxu1 }
 0x202   :  { %1688 = vpow2.f32 %v1557_v46  ;;  %v1559_v50 = vmul.f32 -1.442695, %v501_v47  ;;  %v504_v52 = vadd.f32 %v452_v49, %v409_v44  ;;  %v1561_v39 = vmul.f32 -1.442695, %v503_v35 }
 0x203   :  { %v454_v53 = vpop.f32.mrf.mxu0  ;;  %v497_v34 = vpop.f32.mrf.mxu1  ;;  %v506_v47 = vadd.f32 %v495_v58, %v411_v40 }
 0x204   :  { %1690 = vpow2.f32 %v1559_v50  ;;  %v1558_v54 = vmul.f32 -1.442695, %v504_v52  ;;  %v505_v56 = vadd.f32 %v454_v53, %v410_v48  ;;  %v507_v37 = vadd.f32 %v497_v34, %v412_v33 }
 0x206   :  { %1692 = vpow2.f32 %v1558_v54  ;;  %v1560_v59 = vmul.f32 -1.442695, %v505_v56  ;;  %v1562_v44 = vmul.f32 -1.442695, %v507_v37 }
 0x208   :  { %1694 = vpow2.f32 %v1560_v59 }
 0x209   :  { %1696 = vtanh.f32 %v502_v36 }
 0x20f   :  { %v1689_v38 = vpop.eup %1688 }
 0x210   :  { %v514_v41 = vadd.f32 1.0, %v1689_v38 }
 0x211   :  { %v1691_v42 = vpop.eup %1690 }
 0x212   :  { %1698 = vrcp.f32 %v514_v41  ;;  %v526_v45 = vadd.f32 1.0, %v1691_v42 }
 0x213   :  { %v1693_v46 = vpop.eup %1692  ;;  %1700 = vpow2.f32 %v1561_v39 }
 0x214   :  { %1702 = vrcp.f32 %v526_v45  ;;  %v515_v48 = vadd.f32 1.0, %v1693_v46  ;;  %v559_v45 = vld [vmem:[#allocation4 + $0x50] sm:$0xff] }
 0x215   :  { %v1695_v49 = vpop.eup %1694  ;;  %1704 = vpow2.f32 %v1562_v44 }
 0x216   :  { %1706 = vrcp.f32 %v515_v48  ;;  %v527_v50 = vadd.f32 1.0, %v1695_v49  ;;  %v1697_v43 = vpop.eup %1696 }
 0x217   :  { %1708 = vtanh.f32 %v506_v47 }
 0x218   :  { %1710 = vrcp.f32 %v527_v50  ;;  %v565_v50 = vunpack.c.l.bf16 %v559_v45 }
 0x21f   :  { %v1699_v51 = vpop.eup %1698 }
 0x220   :  { %v1701_v52 = vpop.eup %1700  ;;  %v548_v56 = vmul.f32 %v1699_v51, %v1697_v43 }
 0x221   :  { %v1703_v53 = vpop.eup %1702  ;;  %v540_v61 = vadd.f32 1.0, %v1701_v52 }
 0x222   :  { %v1705_v54 = vpop.eup %1704  ;;  %v546_v57 = vmul.f32 %v1703_v53, %v2174_v55  ;;  %v566_v53 = vunpack.c.h.bf16 %v559_v45 }
 0x223   :  { %v1707_v59 = vpop.eup %1706  ;;  %v541_v33 = vadd.f32 1.0, %v1705_v54  ;;  %1712 = vrcp.f32 %v540_v61 }
 0x224   :  { %v1709_v62 = vpop.eup %1708  ;;  %v2215_v58 = vadd.f32 %v548_v56, %v546_v57 }
 0x225   :  { %v1711_v63 = vpop.eup %1710  ;;  %v549_v34 = vmul.f32 %v1709_v62, %v1707_v59 }
 0x226   :  { %v547_v35 = vmul.f32 %v1711_v63, %v2177_v60  ;;  %1714 = vtanh.f32 %v2215_v58  ;;  %v557_v60 = vld [vmem:[#allocation4 + $0x40] sm:$0xff] }
 0x227   :  { %1716 = vrcp.f32 %v541_v33  ;;  %v561_v44 = vunpack.c.l.bf16 %v557_v60  ;;  %v562_v46 = vunpack.c.h.bf16 %v557_v60  ;;  %v558_v33 = vld [vmem:[#allocation4 + $0x48] sm:$0xff] }
 0x228   :  { %v2218_v36 = vadd.f32 %v549_v34, %v547_v35 }
 0x22a   :  { %1718 = vtanh.f32 %v2218_v36 }
 0x230   :  { %v1713_v37 = vpop.eup %1712 }
 0x233   :  { %v1715_v55 = vpop.eup %1714 }
 0x234   :  { %v1717_v38 = vpop.eup %1716  ;;  %v554_v40 = vmul.f32 %v1715_v55, %v1713_v37  ;;  %v564_v37 = vunpack.c.h.bf16 %v558_v33  ;;  %v560_v55 = vld [vmem:[#allocation4 + $0x58] sm:$0xff] }
 0x237   :  { %v1719_v39 = vpop.eup %1718 }
 0x238   :  { %v555_v41 = vmul.f32 %v1719_v39, %v1717_v38  ;;  %v563_v38 = vunpack.c.l.bf16 %v558_v33  ;;  %v568_v39 = vunpack.c.h.bf16 %v560_v55 }
 0x23a   :  { %v569_v42 = vpack.c.bf16 %v555_v41, %v554_v40 }
 0x23c   :  { %603 = vmatmul.mubr.bf16.vlgmr.msra.gmra.mxu0 %v569_v42  ;;  %646 = vmatmul.mubr.bf16.vlgmr.msra.gmra.mxu1 %v569_v42 }
 0x23d   :  { %727 = vmatpush1.bf16.msra.mxu0 %v2044_v2  ;;  %770 = vmatpush1.bf16.msra.mxu1 %v2057_v7 }
 0x23e   :  { %728 = vmatprep.subr.bf16.mxu0 %v2047_v3  ;;  %771 = vmatprep.subr.bf16.mxu1 %v2067_v10 }
 0x23f   :  { %758 = vmatprep.mubr.bf16.mxu0 %v2014_v0  ;;  %801 = vmatprep.mubr.bf16.mxu1 %v2014_v0 }
 0x241   :  { %729 = vmatpush1.bf16.msra.mxu0 %v2050_v4  ;;  %772 = vmatpush1.bf16.msra.mxu1 %v2069_v11 }
 0x242   :  { %730 = vmatprep.subr.bf16.mxu0 %v2053_v5  ;;  %773 = vmatprep.subr.bf16.mxu1 %v2077_v14 }
 0x245   :  { %731 = vmatpush1.bf16.msra.mxu0 %v2060_v8  ;;  %774 = vmatpush1.bf16.msra.mxu1 %v2081_v15 }
 0x246   :  { %732 = vmatprep.subr.bf16.mxu0 %v2064_v9  ;;  %775 = vmatprep.subr.bf16.mxu1 %v2084_v16 }
 0x249   :  { %733 = vmatpush1.bf16.msra.mxu0 %v2073_v12  ;;  %776 = vmatpush1.bf16.msra.mxu1 %v2093_v19 }
 0x24a   :  { %734 = vmatprep.subr.bf16.mxu0 %v2075_v13  ;;  %777 = vmatprep.subr.bf16.mxu1 %v2096_v20 }
 0x24d   :  { %735 = vmatpush1.bf16.msra.mxu0 %v2087_v17  ;;  %778 = vmatpush1.bf16.msra.mxu1 %v2105_v23 }
 0x24e   :  { %736 = vmatprep.subr.bf16.mxu0 %v2090_v18  ;;  %779 = vmatprep.subr.bf16.mxu1 %v2108_v24 }
 0x251   :  { %737 = vmatpush1.bf16.msra.mxu0 %v2099_v21  ;;  %780 = vmatpush1.bf16.msra.mxu1 %v2117_v27 }
 0x252   :  { %738 = vmatprep.subr.bf16.mxu0 %v2101_v22  ;;  %781 = vmatprep.subr.bf16.mxu1 %v2120_v28 }
 0x255   :  { %739 = vmatpush1.bf16.msra.mxu0 %v2111_v25  ;;  %782 = vmatpush1.bf16.msra.mxu1 %v2127_v30 }
 0x256   :  { %740 = vmatprep.subr.bf16.mxu0 %v2114_v26  ;;  %783 = vmatprep.subr.bf16.mxu1 %v2130_v31 }
 0x259   :  { %741 = vmatpush1.bf16.msra.mxu0 %v2123_v29  ;;  %784 = vmatpush1.bf16.msra.mxu1 %v2134_v32 }
 0x25a   :  { %882 = vmatprep.subr.bf16.mxu0 %v2042_v1  ;;  %925 = vmatprep.subr.bf16.mxu1 %v2055_v6 }
 0x2fc   :  { %v604_v47 = vpop.f32.mrf.mxu0  ;;  %v647_v49 = vpop.f32.mrf.mxu1 }
 0x2fd   :  { %v656_v48 = vadd.f32 %v604_v47, %v561_v44  ;;  %v658_v42 = vadd.f32 %v647_v49, %v563_v38 }
 0x2fe   :  { %v606_v43 = vpop.f32.mrf.mxu0  ;;  %v649_v57 = vpop.f32.mrf.mxu1 }
 0x2ff   :  { %v1563_v51 = vmul.f32 -1.442695, %v656_v48  ;;  %v657_v52 = vadd.f32 %v606_v43, %v562_v46  ;;  %v659_v41 = vadd.f32 %v649_v57, %v564_v37  ;;  %v567_v46 = vunpack.c.l.bf16 %v560_v55 }
 0x300   :  { %v608_v54 = vpop.f32.mrf.mxu0  ;;  %v651_v34 = vpop.f32.mrf.mxu1 }
 0x301   :  { %1720 = vpow2.f32 %v1563_v51  ;;  %v1565_v56 = vmul.f32 -1.442695, %v657_v52  ;;  %v660_v59 = vadd.f32 %v608_v54, %v565_v50  ;;  %v1567_v45 = vmul.f32 -1.442695, %v659_v41 }
 0x302   :  { %v610_v61 = vpop.f32.mrf.mxu0  ;;  %v653_v40 = vpop.f32.mrf.mxu1  ;;  %v662_v52 = vadd.f32 %v651_v34, %v567_v46 }
 0x303   :  { %1722 = vpow2.f32 %v1565_v56  ;;  %v1564_v62 = vmul.f32 -1.442695, %v660_v59  ;;  %v661_v63 = vadd.f32 %v610_v61, %v566_v53  ;;  %v663_v60 = vadd.f32 %v653_v40, %v568_v39 }
 0x305   :  { %1724 = vpow2.f32 %v1564_v62  ;;  %v1566_v35 = vmul.f32 -1.442695, %v661_v63  ;;  %v1568_v50 = vmul.f32 -1.442695, %v663_v60 }
 0x307   :  { %1726 = vpow2.f32 %v1566_v35 }
 0x308   :  { %1728 = vtanh.f32 %v658_v42 }
 0x30e   :  { %v1721_v44 = vpop.eup %1720 }
 0x30f   :  { %v670_v47 = vadd.f32 1.0, %v1721_v44 }
 0x310   :  { %v1723_v48 = vpop.eup %1722 }
 0x311   :  { %1730 = vrcp.f32 %v670_v47  ;;  %v682_v43 = vadd.f32 1.0, %v1723_v48 }
 0x312   :  { %v1725_v51 = vpop.eup %1724  ;;  %1732 = vpow2.f32 %v1567_v45 }
 0x313   :  { %1734 = vrcp.f32 %v682_v43  ;;  %v671_v53 = vadd.f32 1.0, %v1725_v51 }
 0x314   :  { %v1727_v54 = vpop.eup %1726  ;;  %1736 = vpow2.f32 %v1568_v50 }
 0x315   :  { %1738 = vrcp.f32 %v671_v53  ;;  %v683_v56 = vadd.f32 1.0, %v1727_v54  ;;  %v1729_v49 = vpop.eup %1728 }
 0x316   :  { %1740 = vtanh.f32 %v662_v52 }
 0x317   :  { %1742 = vrcp.f32 %v683_v56 }
 0x31e   :  { %v1731_v57 = vpop.eup %1730 }
 0x31f   :  { %v1733_v59 = vpop.eup %1732  ;;  %v704_v63 = vmul.f32 %v1731_v57, %v1729_v49 }
 0x320   :  { %v1735_v61 = vpop.eup %1734  ;;  %v696_v37 = vadd.f32 1.0, %v1733_v59 }
 0x321   :  { %v1737_v62 = vpop.eup %1736  ;;  %v702_v33 = vmul.f32 %v1735_v61, %v2215_v58 }
 0x322   :  { %v1739_v35 = vpop.eup %1738  ;;  %v697_v39 = vadd.f32 1.0, %v1737_v62  ;;  %1744 = vrcp.f32 %v696_v37 }
 0x323   :  { %v1741_v55 = vpop.eup %1740  ;;  %v2257_v34 = vadd.f32 %v704_v63, %v702_v33 }
 0x324   :  { %v1743_v38 = vpop.eup %1742  ;;  %v705_v40 = vmul.f32 %v1741_v55, %v1739_v35 }
 0x325   :  { %v703_v41 = vmul.f32 %v1743_v38, %v2218_v36  ;;  %1746 = vtanh.f32 %v2257_v34 }
 0x326   :  { %1748 = vrcp.f32 %v697_v39 }
 0x327   :  { %v2260_v42 = vadd.f32 %v705_v40, %v703_v41 }
 0x329   :  { %1750 = vtanh.f32 %v2260_v42 }
 0x32f   :  { %v1745_v60 = vpop.eup %1744 }
 0x332   :  { %v1747_v58 = vpop.eup %1746 }
 0x333   :  { %v1749_v44 = vpop.eup %1748  ;;  %v710_v46 = vmul.f32 %v1747_v58, %v1745_v60 }
 0x336   :  { %v1751_v45 = vpop.eup %1750 }
 0x337   :  { %v711_v47 = vmul.f32 %v1751_v45, %v1749_v44 }
 0x339   :  { %v725_v48 = vpack.c.bf16 %v711_v47, %v710_v46 }
 0x33b   :  { %759 = vmatmul.mubr.bf16.vlgmr.msra.gmra.mxu0 %v725_v48  ;;  %802 = vmatmul.mubr.bf16.vlgmr.msra.gmra.mxu1 %v725_v48 }
 0x33c   :  { %883 = vmatpush1.bf16.msra.mxu0 %v2044_v2  ;;  %926 = vmatpush1.bf16.msra.mxu1 %v2057_v7  ;;  %v713_v2 = vld [vmem:[#allocation4 + $0x60] sm:$0xff] }
 0x33d   :  { %884 = vmatprep.subr.bf16.mxu0 %v2047_v3  ;;  %927 = vmatprep.subr.bf16.mxu1 %v2067_v10  ;;  %v717_v3 = vunpack.c.l.bf16 %v713_v2 }
 0x33e   :  { %914 = vmatprep.mubr.bf16.mxu0 %v2014_v0  ;;  %957 = vmatprep.mubr.bf16.mxu1 %v2014_v0 }
 0x340   :  { %885 = vmatpush1.bf16.msra.mxu0 %v2050_v4  ;;  %928 = vmatpush1.bf16.msra.mxu1 %v2069_v11  ;;  %v715_v4 = vld [vmem:[#allocation4 + $0x70] sm:$0xff] }
 0x341   :  { %886 = vmatprep.subr.bf16.mxu0 %v2053_v5  ;;  %929 = vmatprep.subr.bf16.mxu1 %v2077_v14  ;;  %v718_v5 = vunpack.c.h.bf16 %v713_v2  ;;  %v721_v10 = vunpack.c.l.bf16 %v715_v4  ;;  %v722_v14 = vunpack.c.h.bf16 %v715_v4 }
 0x344   :  { %887 = vmatpush1.bf16.msra.mxu0 %v2060_v8  ;;  %930 = vmatpush1.bf16.msra.mxu1 %v2081_v15 }
 0x345   :  { %888 = vmatprep.subr.bf16.mxu0 %v2064_v9  ;;  %931 = vmatprep.subr.bf16.mxu1 %v2084_v16 }
 0x348   :  { %889 = vmatpush1.bf16.msra.mxu0 %v2073_v12  ;;  %932 = vmatpush1.bf16.msra.mxu1 %v2093_v19 }
 0x349   :  { %890 = vmatprep.subr.bf16.mxu0 %v2075_v13  ;;  %933 = vmatprep.subr.bf16.mxu1 %v2096_v20  ;;  %v714_v20 = vld [vmem:[#allocation4 + $0x68] sm:$0xff] }
 0x34c   :  { %891 = vmatpush1.bf16.msra.mxu0 %v2087_v17  ;;  %934 = vmatpush1.bf16.msra.mxu1 %v2105_v23  ;;  %v720_v23 = vunpack.c.h.bf16 %v714_v20 }
 0x34d   :  { %892 = vmatprep.subr.bf16.mxu0 %v2090_v18  ;;  %935 = vmatprep.subr.bf16.mxu1 %v2108_v24  ;;  %v716_v24 = vld [vmem:[#allocation4 + $0x78] sm:$0xff] }
 0x34e   :  { %v723_v53 = vunpack.c.l.bf16 %v716_v24 }
 0x350   :  { %893 = vmatpush1.bf16.msra.mxu0 %v2099_v21  ;;  %936 = vmatpush1.bf16.msra.mxu1 %v2117_v27 }
 0x351   :  { %894 = vmatprep.subr.bf16.mxu0 %v2101_v22  ;;  %937 = vmatprep.subr.bf16.mxu1 %v2120_v28 }
 0x354   :  { %895 = vmatpush1.bf16.msra.mxu0 %v2111_v25  ;;  %938 = vmatpush1.bf16.msra.mxu1 %v2127_v30  ;;  %v719_v25 = vunpack.c.l.bf16 %v714_v20  ;;  %v2344_v20 = vld [vmem:[#allocation7 + $0x80] ss:$16 sps:$4 sm:$0xff]  }
 0x355   :  { %896 = vmatprep.subr.bf16.mxu0 %v2114_v26  ;;  %939 = vmatprep.subr.bf16.mxu1 %v2130_v31  ;;  %v724_v26 = vunpack.c.h.bf16 %v716_v24  ;;  %v2356_v24 = vld [vmem:[#allocation7 + $0x60] ss:$16 sps:$4 sm:$0xff]  }
 0x358   :  { %897 = vmatpush1.bf16.msra.mxu0 %v2123_v29  ;;  %940 = vmatpush1.bf16.msra.mxu1 %v2134_v32 }
 0x359   :  { %1038 = vmatprep.subr.bf16.mxu0 %v2042_v1  ;;  %1081 = vmatprep.subr.bf16.mxu1 %v2055_v6 }
 0x3fb   :  { %v760_v7 = vpop.f32.mrf.mxu0  ;;  %v803_v9 = vpop.f32.mrf.mxu1 }
 0x3fc   :  { %v812_v8 = vadd.f32 %v760_v7, %v717_v3  ;;  %v814_v50 = vadd.f32 %v803_v9, %v719_v25  ;;  %v2359_v25 = vld [vmem:[#allocation7 + $0x68] ss:$16 sps:$4 sm:$0xff]  }
 0x3fd   :  { %v762_v11 = vpop.f32.mrf.mxu0  ;;  %v805_v17 = vpop.f32.mrf.mxu1 }
 0x3fe   :  { %v1569_v12 = vmul.f32 -1.442695, %v812_v8  ;;  %v813_v13 = vadd.f32 %v762_v11, %v718_v5  ;;  %v815_v36 = vadd.f32 %v805_v17, %v720_v23  ;;  %v2306_v11 = vld [vmem:[#allocation7 + $0xe0] ss:$16 sps:$4 sm:$0xff]   ;;  %v2329_v17 = vld [vmem:[#allocation7 + $0xac] ss:$16 sps:$4 sm:$0xff]  }
 0x3ff   :  { %v764_v15 = vpop.f32.mrf.mxu0  ;;  %v807_v21 = vpop.f32.mrf.mxu1  ;;  %v2353_v23 = vld [vmem:[#allocation7 + $0x6c] ss:$16 sps:$4 sm:$0xff]  }
 0x400   :  { %1752 = vpow2.f32 %v1569_v12  ;;  %v1571_v16 = vmul.f32 -1.442695, %v813_v13  ;;  %v816_v18 = vadd.f32 %v764_v15, %v721_v10  ;;  %v1573_v52 = vmul.f32 -1.442695, %v815_v36  ;;  %v2312_v12 = vld [vmem:[#allocation7 + $0xc4] ss:$16 sps:$4 sm:$0xff]  }
 0x401   :  { %v766_v1 = vpop.f32.mrf.mxu0  ;;  %v809_v29 = vpop.f32.mrf.mxu1  ;;  %v818_v61 = vadd.f32 %v807_v21, %v723_v53  ;;  %v2315_v13 = vld [vmem:[#allocation7 + $0xcc] ss:$16 sps:$4 sm:$0xff]   ;;  %v2323_v15 = vld [vmem:[#allocation7 + $0xc8] ss:$16 sps:$4 sm:$0xff]   ;;  %v2368_v36 = vld [vmem:[#allocation7 + $0x40] ss:$16 sps:$4 sm:$0xff]  }
 0x402   :  { %1754 = vpow2.f32 %v1571_v16  ;;  %v1570_v6 = vmul.f32 -1.442695, %v816_v18  ;;  %v817_v19 = vadd.f32 %v766_v1, %v722_v14  ;;  %v819_v43 = vadd.f32 %v809_v29, %v724_v26  ;;  %v2320_v14 = vld [vmem:[#allocation7 + $0xc0] ss:$16 sps:$4 sm:$0xff]   ;;  %v2326_v16 = vld [vmem:[#allocation7 + $0xa4] ss:$16 sps:$4 sm:$0xff]  }
 0x403   :  { %v2332_v18 = vld [vmem:[#allocation7 + $0xa0] ss:$16 sps:$4 sm:$0xff]   ;;  %v2335_v1 = vld [vmem:[#allocation7 + $0xa8] ss:$16 sps:$4 sm:$0xff]   ;;  %v2362_v26 = vld [vmem:[#allocation7 + $0x44] ss:$16 sps:$4 sm:$0xff]  }
 0x404   :  { %1756 = vpow2.f32 %v1570_v6  ;;  %v1572_v22 = vmul.f32 -1.442695, %v817_v19  ;;  %v1574_v49 = vmul.f32 -1.442695, %v819_v43  ;;  %v2338_v6 = vld [vmem:[#allocation7 + $0x84] ss:$16 sps:$4 sm:$0xff]  }
 0x405   :  { %v2341_v19 = vld [vmem:[#allocation7 + $0x8c] ss:$16 sps:$4 sm:$0xff]   ;;  %v2347_v21 = vld [vmem:[#allocation7 + $0x88] ss:$16 sps:$4 sm:$0xff]   ;;  %v2376_v43 = vld [vmem:[#allocation7 + $0x20] ss:$16 sps:$4 sm:$0xff]  }
 0x406   :  { %1758 = vpow2.f32 %v1572_v22  ;;  %v2350_v22 = vld [vmem:[#allocation7 + $0x64] ss:$16 sps:$4 sm:$0xff]   ;;  %v2365_v29 = vld [vmem:[#allocation7 + $0x4c] ss:$16 sps:$4 sm:$0xff]  }
 0x407   :  { %1760 = vtanh.f32 %v814_v50  ;;  %v2372_v50 = vld [vmem:[#allocation7 + $0x24] ss:$16 sps:$4 sm:$0xff]  }
 0x40d   :  { %v1753_v51 = vpop.eup %1752 }
 0x40e   :  { %v826_v54 = vadd.f32 1.0, %v1753_v51  ;;  %v2380_v51 = vld [vmem:[#allocation7 + $0x4] ss:$16 sps:$4 sm:$0xff]  }
 0x40f   :  { %v1755_v56 = vpop.eup %1754 }
 0x410   :  { %1762 = vrcp.f32 %v826_v54  ;;  %v838_v57 = vadd.f32 1.0, %v1755_v56  ;;  %v871_v54 = vld [vmem:[#allocation4 + $0x90] sm:$0xff] }
 0x411   :  { %v1757_v59 = vpop.eup %1756  ;;  %1764 = vpow2.f32 %v1573_v52  ;;  %v2384_v52 = vld [vmem:[#allocation7] ss:$16 sps:$4 sm:$0xff]  }
 0x412   :  { %1766 = vrcp.f32 %v838_v57  ;;  %v827_v62 = vadd.f32 1.0, %v1757_v59  ;;  %v877_v59 = vunpack.c.l.bf16 %v871_v54 }
 0x413   :  { %v1759_v63 = vpop.eup %1758  ;;  %1768 = vpow2.f32 %v1574_v49 }
 0x414   :  { %1770 = vrcp.f32 %v827_v62  ;;  %v839_v33 = vadd.f32 1.0, %v1759_v63  ;;  %v1761_v35 = vpop.eup %1760 }
 0x415   :  { %1772 = vtanh.f32 %v818_v61 }
 0x416   :  { %1774 = vrcp.f32 %v839_v33 }
 0x41d   :  { %v1763_v37 = vpop.eup %1762 }
 0x41e   :  { %v1765_v55 = vpop.eup %1764  ;;  %v860_v40 = vmul.f32 %v1763_v37, %v1761_v35 }
 0x41f   :  { %v1767_v38 = vpop.eup %1766  ;;  %v852_v58 = vadd.f32 1.0, %v1765_v55 }
 0x420   :  { %v1769_v39 = vpop.eup %1768  ;;  %v858_v41 = vmul.f32 %v1767_v38, %v2257_v34 }
 0x421   :  { %v1771_v60 = vpop.eup %1770  ;;  %v853_v47 = vadd.f32 1.0, %v1769_v39  ;;  %1776 = vrcp.f32 %v852_v58 }
 0x422   :  { %v1773_v44 = vpop.eup %1772  ;;  %v2299_v45 = vadd.f32 %v860_v40, %v858_v41  ;;  %v870_v41 = vld [vmem:[#allocation4 + $0x88] sm:$0xff] }
 0x423   :  { %v1775_v46 = vpop.eup %1774  ;;  %v861_v48 = vmul.f32 %v1773_v44, %v1771_v60  ;;  %v876_v44 = vunpack.c.h.bf16 %v870_v41 }
 0x424   :  { %v859_v2 = vmul.f32 %v1775_v46, %v2260_v42  ;;  %1778 = vtanh.f32 %v2299_v45  ;;  %v2309_v42 = vld [vmem:[#allocation7 + $0xe8] ss:$16 sps:$4 sm:$0xff]  }
 0x425   :  { %1780 = vrcp.f32 %v853_v47  ;;  %v872_v46 = vld [vmem:[#allocation4 + $0x98] sm:$0xff]  ;;  %v875_v47 = vunpack.c.l.bf16 %v870_v41 }
 0x426   :  { %v2302_v3 = vadd.f32 %v861_v48, %v859_v2  ;;  %v880_v48 = vunpack.c.h.bf16 %v872_v46 }
 0x428   :  { %1782 = vtanh.f32 %v2302_v3 }
 0x42e   :  { %v1777_v4 = vpop.eup %1776 }
 0x431   :  { %v1779_v34 = vpop.eup %1778 }
 0x432   :  { %v1781_v5 = vpop.eup %1780  ;;  %v866_v8 = vmul.f32 %v1779_v34, %v1777_v4 }
 0x435   :  { %v1783_v7 = vpop.eup %1782 }
 0x436   :  { %v867_v9 = vmul.f32 %v1783_v7, %v1781_v5 }
 0x438   :  { %v881_v10 = vpack.c.bf16 %v867_v9, %v866_v8  ;;  %v879_v9 = vunpack.c.l.bf16 %v872_v46 }
 0x43a   :  { %915 = vmatmul.mubr.bf16.vlgmr.msra.gmra.mxu0 %v881_v10  ;;  %958 = vmatmul.mubr.bf16.vlgmr.msra.gmra.mxu1 %v881_v10 }
 0x43b   :  { %1039 = vmatpush1.bf16.msra.mxu0 %v2306_v11  ;;  %1082 = vmatpush1.bf16.msra.mxu1 %v2309_v42 }
 0x43c   :  { %1040 = vmatprep.subr.bf16.mxu0 %v2312_v12  ;;  %1083 = vmatprep.subr.bf16.mxu1 %v2315_v13 }
 0x43d   :  { %1070 = vmatprep.mubr.bf16.mxu0 %v2014_v0  ;;  %1113 = vmatprep.mubr.bf16.mxu1 %v2014_v0 }
 0x43f   :  { %1041 = vmatpush1.bf16.msra.mxu0 %v2320_v14  ;;  %1084 = vmatpush1.bf16.msra.mxu1 %v2323_v15 }
 0x440   :  { %1042 = vmatprep.subr.bf16.mxu0 %v2326_v16  ;;  %1085 = vmatprep.subr.bf16.mxu1 %v2329_v17 }
 0x443   :  { %1043 = vmatpush1.bf16.msra.mxu0 %v2332_v18  ;;  %1086 = vmatpush1.bf16.msra.mxu1 %v2335_v1 }
 0x444   :  { %1044 = vmatprep.subr.bf16.mxu0 %v2338_v6  ;;  %1087 = vmatprep.subr.bf16.mxu1 %v2341_v19 }
 0x447   :  { %1045 = vmatpush1.bf16.msra.mxu0 %v2344_v20  ;;  %1088 = vmatpush1.bf16.msra.mxu1 %v2347_v21 }
 0x448   :  { %1046 = vmatprep.subr.bf16.mxu0 %v2350_v22  ;;  %1089 = vmatprep.subr.bf16.mxu1 %v2353_v23 }
 0x44b   :  { %1047 = vmatpush1.bf16.msra.mxu0 %v2356_v24  ;;  %1090 = vmatpush1.bf16.msra.mxu1 %v2359_v25 }
 0x44c   :  { %1048 = vmatprep.subr.bf16.mxu0 %v2362_v26  ;;  %1091 = vmatprep.subr.bf16.mxu1 %v2365_v29 }
 0x44f   :  { %1049 = vmatpush1.bf16.msra.mxu0 %v2368_v36  ;;  %1092 = vmatpush1.bf16.msra.mxu1 %v2117_v27  ;;  %v2388_v27 = vld [vmem:[#allocation7 + $0xe4] ss:$16 sps:$4 sm:$0xff]  }
 0x450   :  { %1050 = vmatprep.subr.bf16.mxu0 %v2372_v50  ;;  %1093 = vmatprep.subr.bf16.mxu1 %v2120_v28  ;;  %v2391_v28 = vld [vmem:[#allocation7 + $0xec] ss:$16 sps:$4 sm:$0xff]  }
 0x453   :  { %1051 = vmatpush1.bf16.msra.mxu0 %v2376_v43  ;;  %1094 = vmatpush1.bf16.msra.mxu1 %v2127_v30  ;;  %v869_v30 = vld [vmem:[#allocation4 + $0x80] sm:$0xff] }
 0x454   :  { %1052 = vmatprep.subr.bf16.mxu0 %v2380_v51  ;;  %1095 = vmatprep.subr.bf16.mxu1 %v2130_v31  ;;  %v873_v53 = vunpack.c.l.bf16 %v869_v30  ;;  %v874_v56 = vunpack.c.h.bf16 %v869_v30 }
 0x457   :  { %1053 = vmatpush1.bf16.msra.mxu0 %v2384_v52  ;;  %1096 = vmatpush1.bf16.msra.mxu1 %v2134_v32  ;;  %v878_v32 = vunpack.c.h.bf16 %v871_v54 }
 0x458   :  { %1194 = vmatprep.subr.bf16.mxu0 %v2388_v27  ;;  %1237 = vmatprep.subr.bf16.mxu1 %v2391_v28 }
 0x4fa   :  { %v916_v49 = vpop.f32.mrf.mxu0  ;;  %v959_v57 = vpop.f32.mrf.mxu1 }
 0x4fb   :  { %v968_v31 = vadd.f32 %v916_v49, %v873_v53  ;;  %v970_v34 = vadd.f32 %v959_v57, %v875_v47 }
 0x4fc   :  { %v918_v61 = vpop.f32.mrf.mxu0  ;;  %v961_v37 = vpop.f32.mrf.mxu1 }
 0x4fd   :  { %v1575_v62 = vmul.f32 -1.442695, %v968_v31  ;;  %v969_v63 = vadd.f32 %v918_v61, %v874_v56  ;;  %v971_v4 = vadd.f32 %v961_v37, %v876_v44 }
 0x4fe   :  { %v920_v33 = vpop.f32.mrf.mxu0  ;;  %v963_v60 = vpop.f32.mrf.mxu1 }
 0x4ff   :  { %1784 = vpow2.f32 %v1575_v62  ;;  %v1577_v35 = vmul.f32 -1.442695, %v969_v63  ;;  %v972_v55 = vadd.f32 %v920_v33, %v877_v59  ;;  %v1579_v8 = vmul.f32 -1.442695, %v971_v4 }
 0x500   :  { %v922_v38 = vpop.f32.mrf.mxu0  ;;  %v965_v2 = vpop.f32.mrf.mxu1  ;;  %v974_v49 = vadd.f32 %v963_v60, %v879_v9  ;;  %v2437_v9 = vld [vmem:[#allocation7 + $0xc] ss:$16 sps:$4 sm:$0xff]  }
 0x501   :  { %1786 = vpow2.f32 %v1577_v35  ;;  %v1576_v39 = vmul.f32 -1.442695, %v972_v55  ;;  %v973_v40 = vadd.f32 %v922_v38, %v878_v32  ;;  %v975_v5 = vadd.f32 %v965_v2, %v880_v48 }
 0x503   :  { %1788 = vpow2.f32 %v1576_v39  ;;  %v1578_v58 = vmul.f32 -1.442695, %v973_v40  ;;  %v1580_v53 = vmul.f32 -1.442695, %v975_v5 }
 0x505   :  { %1790 = vpow2.f32 %v1578_v58 }
 0x506   :  { %1792 = vtanh.f32 %v970_v34 }
 0x50c   :  { %v1785_v7 = vpop.eup %1784 }
 0x50d   :  { %v982_v10 = vadd.f32 1.0, %v1785_v7  ;;  %v2429_v7 = vld [vmem:[#allocation7 + $0x2c] ss:$16 sps:$4 sm:$0xff]  }
 0x50e   :  { %v1787_v30 = vpop.eup %1786 }
 0x50f   :  { %1794 = vrcp.f32 %v982_v10  ;;  %v994_v54 = vadd.f32 1.0, %v1787_v30  ;;  %v2441_v10 = vld [vmem:[#allocation7 + $0x8] ss:$16 sps:$4 sm:$0xff]   ;;  %v1025_v30 = vld [vmem:[#allocation4 + $0xa0] sm:$0xff] }
 0x510   :  { %v1789_v56 = vpop.eup %1788  ;;  %1796 = vpow2.f32 %v1579_v8  ;;  %v2433_v8 = vld [vmem:[#allocation7 + $0x28] ss:$16 sps:$4 sm:$0xff]  }
 0x511   :  { %1798 = vrcp.f32 %v994_v54  ;;  %v983_v31 = vadd.f32 1.0, %v1789_v56  ;;  %v1027_v54 = vld [vmem:[#allocation4 + $0xb0] sm:$0xff]  ;;  %v1030_v56 = vunpack.c.h.bf16 %v1025_v30 }
 0x512   :  { %v1791_v59 = vpop.eup %1790  ;;  %1800 = vpow2.f32 %v1580_v53  ;;  %v1029_v53 = vunpack.c.l.bf16 %v1025_v30 }
 0x513   :  { %1802 = vrcp.f32 %v983_v31  ;;  %v995_v61 = vadd.f32 1.0, %v1791_v59  ;;  %v1793_v57 = vpop.eup %1792 }
 0x514   :  { %1804 = vtanh.f32 %v974_v49 }
 0x515   :  { %1806 = vrcp.f32 %v995_v61  ;;  %v1033_v61 = vunpack.c.l.bf16 %v1027_v54 }
 0x51c   :  { %v1795_v62 = vpop.eup %1794 }
 0x51d   :  { %v1797_v63 = vpop.eup %1796  ;;  %v1016_v35 = vmul.f32 %v1795_v62, %v1793_v57 }
 0x51e   :  { %v1799_v32 = vpop.eup %1798  ;;  %v1008_v38 = vadd.f32 1.0, %v1797_v63 }
 0x51f   :  { %v1801_v33 = vpop.eup %1800  ;;  %v1014_v37 = vmul.f32 %v1799_v32, %v2299_v45  ;;  %v1034_v32 = vunpack.c.h.bf16 %v1027_v54 }
 0x520   :  { %v1803_v55 = vpop.eup %1802  ;;  %v1009_v60 = vadd.f32 1.0, %v1801_v33  ;;  %1808 = vrcp.f32 %v1008_v38 }
 0x521   :  { %v1805_v39 = vpop.eup %1804  ;;  %v2395_v40 = vadd.f32 %v1016_v35, %v1014_v37 }
 0x522   :  { %v1807_v41 = vpop.eup %1806  ;;  %v1017_v58 = vmul.f32 %v1805_v39, %v1803_v55  ;;  %v1026_v39 = vld [vmem:[#allocation4 + $0xa8] sm:$0xff] }
 0x523   :  { %v1015_v44 = vmul.f32 %v1807_v41, %v2302_v3  ;;  %1810 = vtanh.f32 %v2395_v40  ;;  %v2425_v3 = vld [vmem:[#allocation7 + $0x48] ss:$16 sps:$4 sm:$0xff]  }
 0x524   :  { %1812 = vrcp.f32 %v1009_v60 }
 0x525   :  { %v2398_v46 = vadd.f32 %v1017_v58, %v1015_v44  ;;  %v1032_v58 = vunpack.c.h.bf16 %v1026_v39  ;;  %v1028_v44 = vld [vmem:[#allocation4 + $0xb8] sm:$0xff] }
 0x527   :  { %1814 = vtanh.f32 %v2398_v46 }
 0x52d   :  { %v1809_v47 = vpop.eup %1808 }
 0x530   :  { %v1811_v45 = vpop.eup %1810 }
 0x531   :  { %v1813_v48 = vpop.eup %1812  ;;  %v1022_v4 = vmul.f32 %v1811_v45, %v1809_v47  ;;  %v1031_v47 = vunpack.c.l.bf16 %v1026_v39  ;;  %v1036_v45 = vunpack.c.h.bf16 %v1028_v44 }
 0x534   :  { %v1815_v2 = vpop.eup %1814 }
 0x535   :  { %v1023_v34 = vmul.f32 %v1815_v2, %v1813_v48 }
 0x537   :  { %v1037_v5 = vpack.c.bf16 %v1023_v34, %v1022_v4 }
 0x539   :  { %1071 = vmatmul.mubr.bf16.vlgmr.msra.gmra.mxu0 %v1037_v5  ;;  %1114 = vmatmul.mubr.bf16.vlgmr.msra.gmra.mxu1 %v1037_v5 }
 0x53a   :  { %1195 = vmatpush1.bf16.msra.mxu0 %v2306_v11  ;;  %1238 = vmatpush1.bf16.msra.mxu1 %v2309_v42 }
 0x53b   :  { %1196 = vmatprep.subr.bf16.mxu0 %v2312_v12  ;;  %1239 = vmatprep.subr.bf16.mxu1 %v2315_v13 }
 0x53c   :  { %1226 = vmatprep.mubr.bf16.mxu0 %v2014_v0  ;;  %1269 = vmatprep.mubr.bf16.mxu1 %v2014_v0 }
 0x53e   :  { %1197 = vmatpush1.bf16.msra.mxu0 %v2320_v14  ;;  %1240 = vmatpush1.bf16.msra.mxu1 %v2323_v15 }
 0x53f   :  { %1198 = vmatprep.subr.bf16.mxu0 %v2326_v16  ;;  %1241 = vmatprep.subr.bf16.mxu1 %v2329_v17 }
 0x542   :  { %1199 = vmatpush1.bf16.msra.mxu0 %v2332_v18  ;;  %1242 = vmatpush1.bf16.msra.mxu1 %v2335_v1 }
 0x543   :  { %1200 = vmatprep.subr.bf16.mxu0 %v2338_v6  ;;  %1243 = vmatprep.subr.bf16.mxu1 %v2341_v19 }
 0x546   :  { %1201 = vmatpush1.bf16.msra.mxu0 %v2344_v20  ;;  %1244 = vmatpush1.bf16.msra.mxu1 %v2347_v21 }
 0x547   :  { %1202 = vmatprep.subr.bf16.mxu0 %v2350_v22  ;;  %1245 = vmatprep.subr.bf16.mxu1 %v2353_v23 }
 0x54a   :  { %1203 = vmatpush1.bf16.msra.mxu0 %v2356_v24  ;;  %1246 = vmatpush1.bf16.msra.mxu1 %v2359_v25 }
 0x54b   :  { %1204 = vmatprep.subr.bf16.mxu0 %v2362_v26  ;;  %1247 = vmatprep.subr.bf16.mxu1 %v2365_v29 }
 0x54e   :  { %1205 = vmatpush1.bf16.msra.mxu0 %v2368_v36  ;;  %1248 = vmatpush1.bf16.msra.mxu1 %v2425_v3 }
 0x54f   :  { %1206 = vmatprep.subr.bf16.mxu0 %v2372_v50  ;;  %1249 = vmatprep.subr.bf16.mxu1 %v2429_v7 }
 0x552   :  { %1207 = vmatpush1.bf16.msra.mxu0 %v2376_v43  ;;  %1250 = vmatpush1.bf16.msra.mxu1 %v2433_v8 }
 0x553   :  { %1208 = vmatprep.subr.bf16.mxu0 %v2380_v51  ;;  %1251 = vmatprep.subr.bf16.mxu1 %v2437_v9 }
 0x556   :  { %1209 = vmatpush1.bf16.msra.mxu0 %v2384_v52  ;;  %1252 = vmatpush1.bf16.msra.mxu1 %v2441_v10 }
 0x557   :  { %1350 = vmatprep.subr.bf16.mxu0 %v2388_v27  ;;  %1393 = vmatprep.subr.bf16.mxu1 %v2391_v28 }
 0x5f9   :  { %v1072_v49 = vpop.f32.mrf.mxu0  ;;  %v1115_v59 = vpop.f32.mrf.mxu1 }
 0x5fa   :  { %v1124_v31 = vadd.f32 %v1072_v49, %v1029_v53  ;;  %v1126_v4 = vadd.f32 %v1115_v59, %v1031_v47  ;;  %v1035_v53 = vunpack.c.l.bf16 %v1028_v44 }
 0x5fb   :  { %v1074_v57 = vpop.f32.mrf.mxu0  ;;  %v1117_v37 = vpop.f32.mrf.mxu1 }
 0x5fc   :  { %v1581_v62 = vmul.f32 -1.442695, %v1124_v31  ;;  %v1125_v63 = vadd.f32 %v1074_v57, %v1030_v56  ;;  %v1127_v2 = vadd.f32 %v1117_v37, %v1032_v58 }
 0x5fd   :  { %v1076_v33 = vpop.f32.mrf.mxu0  ;;  %v1119_v41 = vpop.f32.mrf.mxu1 }
 0x5fe   :  { %1816 = vpow2.f32 %v1581_v62  ;;  %v1583_v35 = vmul.f32 -1.442695, %v1125_v63  ;;  %v1128_v55 = vadd.f32 %v1076_v33, %v1033_v61  ;;  %v1585_v30 = vmul.f32 -1.442695, %v1127_v2 }
 0x5ff   :  { %v1078_v27 = vpop.f32.mrf.mxu0  ;;  %v1121_v48 = vpop.f32.mrf.mxu1  ;;  %v1130_v57 = vadd.f32 %v1119_v41, %v1035_v53 }
 0x600   :  { %1818 = vpow2.f32 %v1583_v35  ;;  %v1582_v28 = vmul.f32 -1.442695, %v1128_v55  ;;  %v1129_v38 = vadd.f32 %v1078_v27, %v1034_v32  ;;  %v1131_v34 = vadd.f32 %v1121_v48, %v1036_v45 }
 0x602   :  { %1820 = vpow2.f32 %v1582_v28  ;;  %v1584_v60 = vmul.f32 -1.442695, %v1129_v38  ;;  %v1586_v49 = vmul.f32 -1.442695, %v1131_v34 }
 0x604   :  { %1822 = vpow2.f32 %v1584_v60 }
 0x605   :  { %1824 = vtanh.f32 %v1126_v4 }
 0x60b   :  { %v1817_v5 = vpop.eup %1816 }
 0x60c   :  { %v1138_v54 = vadd.f32 1.0, %v1817_v5 }
 0x60d   :  { %v1819_v56 = vpop.eup %1818 }
 0x60e   :  { %1826 = vrcp.f32 %v1138_v54  ;;  %v1150_v31 = vadd.f32 1.0, %v1819_v56 }
 0x60f   :  { %v1821_v61 = vpop.eup %1820  ;;  %1828 = vpow2.f32 %v1585_v30 }
 0x610   :  { %1830 = vrcp.f32 %v1150_v31  ;;  %v1139_v62 = vadd.f32 1.0, %v1821_v61 }
 0x611   :  { %v1823_v63 = vpop.eup %1822  ;;  %1832 = vpow2.f32 %v1586_v49 }
 0x612   :  { %1834 = vrcp.f32 %v1139_v62  ;;  %v1151_v32 = vadd.f32 1.0, %v1823_v63  ;;  %v1825_v59 = vpop.eup %1824 }
 0x613   :  { %1836 = vtanh.f32 %v1130_v57 }
 0x614   :  { %1838 = vrcp.f32 %v1151_v32 }
 0x61b   :  { %v1827_v33 = vpop.eup %1826 }
 0x61c   :  { %v1829_v35 = vpop.eup %1828  ;;  %v1172_v27 = vmul.f32 %v1827_v33, %v1825_v59 }
 0x61d   :  { %v1831_v37 = vpop.eup %1830  ;;  %v1164_v39 = vadd.f32 1.0, %v1829_v35 }
 0x61e   :  { %v1833_v55 = vpop.eup %1832  ;;  %v1170_v28 = vmul.f32 %v1831_v37, %v2395_v40 }
 0x61f   :  { %v1835_v38 = vpop.eup %1834  ;;  %v1165_v44 = vadd.f32 1.0, %v1833_v55  ;;  %1840 = vrcp.f32 %v1164_v39 }
 0x620   :  { %v1837_v60 = vpop.eup %1836  ;;  %v2447_v41 = vadd.f32 %v1172_v27, %v1170_v28 }
 0x621   :  { %v1839_v58 = vpop.eup %1838  ;;  %v1173_v47 = vmul.f32 %v1837_v60, %v1835_v38 }
 0x622   :  { %v1171_v45 = vmul.f32 %v1839_v58, %v2398_v46  ;;  %1842 = vtanh.f32 %v2447_v41 }
 0x623   :  { %1844 = vrcp.f32 %v1165_v44 }
 0x624   :  { %v2450_v48 = vadd.f32 %v1173_v47, %v1171_v45 }
 0x626   :  { %1846 = vtanh.f32 %v2450_v48 }
 0x62c   :  { %v1841_v2 = vpop.eup %1840 }
 0x62f   :  { %v1843_v40 = vpop.eup %1842 }
 0x630   :  { %v1845_v4 = vpop.eup %1844  ;;  %v1178_v5 = vmul.f32 %v1843_v40, %v1841_v2 }
 0x633   :  { %v1847_v34 = vpop.eup %1846 }
 0x634   :  { %v1179_v30 = vmul.f32 %v1847_v34, %v1845_v4 }
 0x636   :  { %v1193_v53 = vpack.c.bf16 %v1179_v30, %v1178_v5 }
 0x638   :  { %1227 = vmatmul.mubr.bf16.vlgmr.msra.gmra.mxu0 %v1193_v53  ;;  %1270 = vmatmul.mubr.bf16.vlgmr.msra.gmra.mxu1 %v1193_v53 }
 0x639   :  { %1351 = vmatpush1.bf16.msra.mxu0 %v2306_v11  ;;  %1394 = vmatpush1.bf16.msra.mxu1 %v2309_v42  ;;  %v1183_v42 = vld [vmem:[#allocation4 + $0xd0] sm:$0xff] }
 0x63a   :  { %1352 = vmatprep.subr.bf16.mxu0 %v2312_v12  ;;  %1395 = vmatprep.subr.bf16.mxu1 %v2315_v13 }
 0x63b   :  { %1382 = vmatprep.mubr.bf16.mxu0 %v2014_v0  ;;  %1425 = vmatprep.mubr.bf16.mxu1 %v2014_v0  ;;  %v1181_v0 = vld [vmem:[#allocation4 + $0xc0] sm:$0xff] }
 0x63c   :  { %v1185_v11 = vunpack.c.l.bf16 %v1181_v0  ;;  %v1186_v12 = vunpack.c.h.bf16 %v1181_v0 }
 0x63d   :  { %1353 = vmatpush1.bf16.msra.mxu0 %v2320_v14  ;;  %1396 = vmatpush1.bf16.msra.mxu1 %v2323_v15 }
 0x63e   :  { %1354 = vmatprep.subr.bf16.mxu0 %v2326_v16  ;;  %1397 = vmatprep.subr.bf16.mxu1 %v2329_v17  ;;  %v1189_v16 = vunpack.c.l.bf16 %v1183_v42 }
 0x641   :  { %1355 = vmatpush1.bf16.msra.mxu0 %v2332_v18  ;;  %1398 = vmatpush1.bf16.msra.mxu1 %v2335_v1 }
 0x642   :  { %1356 = vmatprep.subr.bf16.mxu0 %v2338_v6  ;;  %1399 = vmatprep.subr.bf16.mxu1 %v2341_v19  ;;  %v1190_v6 = vunpack.c.h.bf16 %v1183_v42  ;;  %v1337_v42 = vld [vmem:[#allocation4 + $0xe0] sm:$0xff] }
 0x645   :  { %1357 = vmatpush1.bf16.msra.mxu0 %v2344_v20  ;;  %1400 = vmatpush1.bf16.msra.mxu1 %v2347_v21 }
 0x646   :  { %1358 = vmatprep.subr.bf16.mxu0 %v2350_v22  ;;  %1401 = vmatprep.subr.bf16.mxu1 %v2353_v23 }
 0x649   :  { %1359 = vmatpush1.bf16.msra.mxu0 %v2356_v24  ;;  %1402 = vmatpush1.bf16.msra.mxu1 %v2359_v25 }
 0x64a   :  { %1360 = vmatprep.subr.bf16.mxu0 %v2362_v26  ;;  %1403 = vmatprep.subr.bf16.mxu1 %v2365_v29  ;;  %v1182_v26 = vld [vmem:[#allocation4 + $0xc8] sm:$0xff] }
 0x64d   :  { %1361 = vmatpush1.bf16.msra.mxu0 %v2368_v36  ;;  %1404 = vmatpush1.bf16.msra.mxu1 %v2425_v3 }
 0x64e   :  { %1362 = vmatprep.subr.bf16.mxu0 %v2372_v50  ;;  %1405 = vmatprep.subr.bf16.mxu1 %v2429_v7  ;;  %v1188_v50 = vunpack.c.h.bf16 %v1182_v26 }
 0x651   :  { %1363 = vmatpush1.bf16.msra.mxu0 %v2376_v43  ;;  %1406 = vmatpush1.bf16.msra.mxu1 %v2433_v8  ;;  %v1184_v43 = vld [vmem:[#allocation4 + $0xd8] sm:$0xff] }
 0x652   :  { %1364 = vmatprep.subr.bf16.mxu0 %v2380_v51  ;;  %1407 = vmatprep.subr.bf16.mxu1 %v2437_v9  ;;  %v1187_v51 = vunpack.c.l.bf16 %v1182_v26  ;;  %v1191_v54 = vunpack.c.l.bf16 %v1184_v43 }
 0x655   :  { %1365 = vmatpush1.bf16.msra.mxu0 %v2384_v52  ;;  %1408 = vmatpush1.bf16.msra.mxu1 %v2441_v10  ;;  %v1192_v52 = vunpack.c.h.bf16 %v1184_v43 }
 0x6f8   :  { %v1228_v13 = vpop.f32.mrf.mxu0  ;;  %v1271_v15 = vpop.f32.mrf.mxu1 }
 0x6f9   :  { %v1280_v14 = vadd.f32 %v1228_v13, %v1185_v11  ;;  %v1282_v7 = vadd.f32 %v1271_v15, %v1187_v51  ;;  %v1342_v13 = vunpack.c.h.bf16 %v1337_v42  ;;  %v1340_v51 = vld [vmem:[#allocation4 + $0xf8] sm:$0xff] }
 0x6fa   :  { %v1230_v17 = vpop.f32.mrf.mxu0  ;;  %v1273_v21 = vpop.f32.mrf.mxu1 }
 0x6fb   :  { %v1587_v18 = vmul.f32 -1.442695, %v1280_v14  ;;  %v1281_v1 = vadd.f32 %v1230_v17, %v1186_v12  ;;  %v1283_v3 = vadd.f32 %v1273_v21, %v1188_v50  ;;  %v1341_v12 = vunpack.c.l.bf16 %v1337_v42 }
 0x6fc   :  { %v1232_v19 = vpop.f32.mrf.mxu0  ;;  %v1275_v29 = vpop.f32.mrf.mxu1 }
 0x6fd   :  { %1848 = vpow2.f32 %v1587_v18  ;;  %v1589_v20 = vmul.f32 -1.442695, %v1281_v1  ;;  %v1284_v22 = vadd.f32 %v1232_v19, %v1189_v16  ;;  %v1591_v10 = vmul.f32 -1.442695, %v1283_v3 }
 0x6fe   :  { %v1234_v23 = vpop.f32.mrf.mxu0  ;;  %v1277_v46 = vpop.f32.mrf.mxu1  ;;  %v1286_v62 = vadd.f32 %v1275_v29, %v1191_v54 }
 0x6ff   :  { %1850 = vpow2.f32 %v1589_v20  ;;  %v1588_v24 = vmul.f32 -1.442695, %v1284_v22  ;;  %v1285_v25 = vadd.f32 %v1234_v23, %v1190_v6  ;;  %v1287_v8 = vadd.f32 %v1277_v46, %v1192_v52 }
 0x700   :  { %v1348_v46 = vunpack.c.h.bf16 %v1340_v51 }
 0x701   :  { %1852 = vpow2.f32 %v1588_v24  ;;  %v1590_v36 = vmul.f32 -1.442695, %v1285_v25  ;;  %v1592_v31 = vmul.f32 -1.442695, %v1287_v8  ;;  %v1338_v25 = vld [vmem:[#allocation4 + $0xe8] sm:$0xff] }
 0x703   :  { %1854 = vpow2.f32 %v1590_v36  ;;  %v1344_v36 = vunpack.c.h.bf16 %v1338_v25 }
 0x704   :  { %1856 = vtanh.f32 %v1282_v7  ;;  %v1343_v7 = vunpack.c.l.bf16 %v1338_v25 }
 0x70a   :  { %v1849_v9 = vpop.eup %1848 }
 0x70b   :  { %v1294_v56 = vadd.f32 1.0, %v1849_v9 }
 0x70c   :  { %v1851_v49 = vpop.eup %1850 }
 0x70d   :  { %1858 = vrcp.f32 %v1294_v56  ;;  %v1306_v61 = vadd.f32 1.0, %v1851_v49  ;;  %v1347_v56 = vunpack.c.l.bf16 %v1340_v51 }
 0x70e   :  { %v1853_v57 = vpop.eup %1852  ;;  %1860 = vpow2.f32 %v1591_v10 }
 0x70f   :  { %1862 = vrcp.f32 %v1306_v61  ;;  %v1295_v63 = vadd.f32 1.0, %v1853_v57 }
 0x710   :  { %v1855_v32 = vpop.eup %1854  ;;  %1864 = vpow2.f32 %v1592_v31 }
 0x711   :  { %1866 = vrcp.f32 %v1295_v63  ;;  %v1307_v59 = vadd.f32 1.0, %v1855_v32  ;;  %v1857_v33 = vpop.eup %1856 }
 0x712   :  { %1868 = vtanh.f32 %v1286_v62 }
 0x713   :  { %1870 = vrcp.f32 %v1307_v59 }
 0x71a   :  { %v1859_v35 = vpop.eup %1858 }
 0x71b   :  { %v1861_v37 = vpop.eup %1860  ;;  %v1328_v28 = vmul.f32 %v1859_v35, %v1857_v33 }
 0x71c   :  { %v1863_v55 = vpop.eup %1862  ;;  %v1320_v60 = vadd.f32 1.0, %v1861_v37 }
 0x71d   :  { %v1865_v27 = vpop.eup %1864  ;;  %v1326_v38 = vmul.f32 %v1863_v55, %v2447_v41 }
 0x71e   :  { %v1867_v39 = vpop.eup %1866  ;;  %v1321_v45 = vadd.f32 1.0, %v1865_v27  ;;  %1872 = vrcp.f32 %v1320_v60 }
 0x71f   :  { %v1869_v58 = vpop.eup %1868  ;;  %v2487_v44 = vadd.f32 %v1328_v28, %v1326_v38 }
 0x720   :  { %v1871_v47 = vpop.eup %1870  ;;  %v1329_v2 = vmul.f32 %v1869_v58, %v1867_v39 }
 0x721   :  { %v1327_v40 = vmul.f32 %v1871_v47, %v2450_v48  ;;  %1874 = vtanh.f32 %v2487_v44  ;;  %v1339_v48 = vld [vmem:[#allocation4 + $0xf0] sm:$0xff] }
 0x722   :  { %1876 = vrcp.f32 %v1321_v45  ;;  %v1345_v17 = vunpack.c.l.bf16 %v1339_v48  ;;  %v1346_v19 = vunpack.c.h.bf16 %v1339_v48 }
 0x723   :  { %v2490_v4 = vadd.f32 %v1329_v2, %v1327_v40 }
 0x725   :  { %1878 = vtanh.f32 %v2490_v4 }
 0x72b   :  { %v1873_v34 = vpop.eup %1872 }
 0x72e   :  { %v1875_v41 = vpop.eup %1874 }
 0x72f   :  { %v1877_v5 = vpop.eup %1876  ;;  %v1334_v53 = vmul.f32 %v1875_v41, %v1873_v34 }
 0x732   :  { %v1879_v30 = vpop.eup %1878 }
 0x733   :  { %v1335_v0 = vmul.f32 %v1879_v30, %v1877_v5 }
 0x735   :  { %v1349_v11 = vpack.c.bf16 %v1335_v0, %v1334_v53 }
 0x737   :  { %1383 = vmatmul.mubr.bf16.vlgmr.msra.gmra.mxu0 %v1349_v11  ;;  %1426 = vmatmul.mubr.bf16.vlgmr.msra.gmra.mxu1 %v1349_v11 }
 0x7f7   :  { %v1384_v14 = vpop.f32.mrf.mxu0  ;;  %v1427_v16 = vpop.f32.mrf.mxu1 }
 0x7f8   :  { %v1436_v15 = vadd.f32 %v1384_v14, %v1341_v12  ;;  %v1438_v54 = vadd.f32 %v1427_v16, %v1343_v7 }
 0x7f9   :  { %v1386_v18 = vpop.f32.mrf.mxu0  ;;  %v1429_v22 = vpop.f32.mrf.mxu1 }
 0x7fa   :  { %v1593_v1 = vmul.f32 -1.442695, %v1436_v15  ;;  %v1437_v6 = vadd.f32 %v1386_v18, %v1342_v13  ;;  %v1439_v52 = vadd.f32 %v1429_v22, %v1344_v36 }
 0x7fb   :  { %v1388_v20 = vpop.f32.mrf.mxu0  ;;  %v1431_v50 = vpop.f32.mrf.mxu1 }
 0x7fc   :  { %1880 = vpow2.f32 %v1593_v1  ;;  %v1595_v21 = vmul.f32 -1.442695, %v1437_v6  ;;  %v1440_v23 = vadd.f32 %v1388_v20, %v1345_v17  ;;  %v1597_v8 = vmul.f32 -1.442695, %v1439_v52 }
 0x7fd   :  { %v1390_v24 = vpop.f32.mrf.mxu0  ;;  %v1433_v3 = vpop.f32.mrf.mxu1  ;;  %v1442_v63 = vadd.f32 %v1431_v50, %v1347_v56 }
 0x7fe   :  { %1882 = vpow2.f32 %v1595_v21  ;;  %v1594_v26 = vmul.f32 -1.442695, %v1440_v23  ;;  %v1441_v29 = vadd.f32 %v1390_v24, %v1346_v19  ;;  %v1443_v9 = vadd.f32 %v1433_v3, %v1348_v46 }
 0x800   :  { %1884 = vpow2.f32 %v1594_v26  ;;  %v1596_v43 = vmul.f32 -1.442695, %v1441_v29  ;;  %v1598_v61 = vmul.f32 -1.442695, %v1443_v9 }
 0x802   :  { %1886 = vpow2.f32 %v1596_v43 }
 0x803   :  { %1888 = vpow2.f32 %v1597_v8 }
 0x809   :  { %v1881_v10 = vpop.eup %1880 }
 0x80a   :  { %v1450_v49 = vadd.f32 1.0, %v1881_v10 }
 0x80b   :  { %v1883_v31 = vpop.eup %1882 }
 0x80c   :  { %1890 = vrcp.f32 %v1450_v49  ;;  %v1462_v57 = vadd.f32 1.0, %v1883_v31 }
 0x80d   :  { %v1885_v62 = vpop.eup %1884  ;;  %1892 = vtanh.f32 %v1438_v54 }
 0x80e   :  { %1894 = vrcp.f32 %v1462_v57  ;;  %v1451_v32 = vadd.f32 1.0, %v1885_v62 }
 0x80f   :  { %v1887_v59 = vpop.eup %1886  ;;  %1896 = vpow2.f32 %v1598_v61 }
 0x810   :  { %1898 = vrcp.f32 %v1451_v32  ;;  %v1463_v33 = vadd.f32 1.0, %v1887_v59  ;;  %v1889_v35 = vpop.eup %1888 }
 0x811   :  { %1900 = vtanh.f32 %v1442_v63  ;;  %v1476_v28 = vadd.f32 1.0, %v1889_v35 }
 0x812   :  { %1902 = vrcp.f32 %v1463_v33 }
 0x813   :  { %1904 = vrcp.f32 %v1476_v28 }
 0x819   :  { %v1891_v37 = vpop.eup %1890 }
 0x81a   :  { %v1893_v55 = vpop.eup %1892 }
 0x81b   :  { %v1895_v27 = vpop.eup %1894  ;;  %v1484_v39 = vmul.f32 %v1893_v55, %v1891_v37 }
 0x81c   :  { %v1897_v38 = vpop.eup %1896  ;;  %v1482_v60 = vmul.f32 %v1895_v27, %v2487_v44 }
 0x81d   :  { %v1899_v58 = vpop.eup %1898  ;;  %v1477_v40 = vadd.f32 1.0, %v1897_v38 }
 0x81e   :  { %v1901_v47 = vpop.eup %1900  ;;  %v1486_v45 = vadd.f32 %v1484_v39, %v1482_v60 }
 0x81f   :  { %v1903_v2 = vpop.eup %1902  ;;  %v1485_v34 = vmul.f32 %v1901_v47, %v1899_v58 }
 0x820   :  { %1906 = vtanh.f32 %v1486_v45  ;;  %v1483_v41 = vmul.f32 %v1903_v2, %v2490_v4  ;;  %v1905_v30 = vpop.eup %1904 }
 0x821   :  { %1908 = vrcp.f32 %v1477_v40 }
 0x822   :  { %v1487_v5 = vadd.f32 %v1485_v34, %v1483_v41 }
 0x824   :  { %1910 = vtanh.f32 %v1487_v5 }
 0x82d   :  { %v1907_v53 = vpop.eup %1906 }
 0x82e   :  { %v1490_v0 = vmul.f32 %v1907_v53, %v1905_v30  ;;  %v1909_v11 = vpop.eup %1908 }
 0x830   :  { %1499 = vst [vmem:[#allocation9] sm:$0xff] %v1490_v0 }
 0x831   :  { %v1911_v44 = vpop.eup %1910 }
 0x832   :  { %v1491_v42 = vmul.f32 %v1911_v44, %v1909_v11 }
 0x834   :  { %1500 = vst [vmem:[#allocation9 + $0x8] sm:$0xff] %v1491_v42 }
 0x835   :  { %1995 = shalt.err (!%p1992_p0)
}
 0x836   :  { %s2017_s22 = smov 128   ;;  %s2018_s23 = smov 8  }
 0x837   :  { %1512 = dma.vmem_to_hbm [thread:$0]  %s1507_s1, 256, %s2501_s2, [#allocation6], %s2017_s22, %s2017_s22, %s2018_s23  }
 0x838   :  { %2008 = dma.done.wait [#allocation6], 256  }
 0x839   :  { %2009 = vsyncadd [#allocation6], 4294967040 }
 0x83a   :  { %1516 = vsyncpa [#allocation5], 1 }
 0x83b   :  { %1517 = vsyncpa [#allocation8], 1 }
 0x83c   :  { %1518 = vsyncpa [#allocation6], 1 }

</bundles_post_ra>
